<compile_context>
chip_gen: v6e
topology: v6e:2x2x1
jax: 0.10.0
libtpu: 0.0.40
codegen_flags: <defaults>
</compile_context>

<pallas_src>
import functools
import math

import jax
import jax.numpy as jnp
from jax.experimental import pallas as pl

# ----------------------------- model config ---------------------------------
VOCAB = 100
VOCAB_PAD = 128                     # lane-aligned one-hot width
HIDDEN = 32
NUM_LAYERS = 2
NUM_HEADS = 2
HEAD_DIM = HIDDEN // NUM_HEADS
INTERMEDIATE = 64
MAX_POS = 16
TYPE_VOCAB = 2
NUM_LABELS = 2
LN_EPS = 1e-12

# f32 table row offsets (tab input): positions | token types | emb LN g/b | cls bias
_T_TYPE = MAX_POS
_T_EMB_G = MAX_POS + TYPE_VOCAB
_T_EMB_B = _T_EMB_G + 1
_T_CLS_B = _T_EMB_B + 1


# ------------------------------ fused kernel ---------------------------------
def _fused_forward_kernel(colm_ref, rowm_ref, wordcls_ref, tab_ref,
                          w3_ref, wo2_ref, vecs_ref, labels_ref,
                          logits_ref, loss_ref, *, B, S):
    H, I = HIDDEN, INTERMEDIATE
    BS = B * S

    def layer_norm(y, g, b):
        mu = jnp.mean(y, axis=-1, keepdims=True)
        var = jnp.mean(jnp.square(y - mu), axis=-1, keepdims=True)
        return (y - mu) * jax.lax.rsqrt(var + LN_EPS) * g + b

    # ---- per-row / per-key metadata (floats; ids are exact small integers) --
    colm = colm_ref[...]                       # [BS, 3]: word id | token type | batch idx
    ids_f = colm[:, 0:1]
    tt_f = colm[:, 1:2]
    qbatch = colm[:, 2:3]                      # [BS, 1]
    rowm = rowm_ref[...]                       # [2, BS]: key mask | key batch idx
    mask_k = rowm[0:1, :]
    kbatch = rowm[1:2, :]

    # Block-diagonal additive attention bias (batch isolation + key padding
    # mask).  Hoisted once; reused by every layer and head.
    same_batch = qbatch == kbatch                          # [BS, BS]
    valid = jnp.where(same_batch, mask_k, 0.0)             # 1 keep / 0 drop
    attn_bias = (valid - 1.0) * 1e9                        # 0 / -1e9

    # ---- embeddings: one-hot MXU gather for the (lane-aligned) word table ---
    iota_v = jax.lax.broadcasted_iota(
        jnp.int32, (BS, VOCAB_PAD), 1).astype(jnp.float32)
    onehot = (iota_v == ids_f).astype(jnp.bfloat16)        # [BS, VOCAB_PAD]
    word = jnp.dot(onehot, wordcls_ref[0:VOCAB_PAD, :],
                   preferred_element_type=jnp.float32)     # [BS, H]

    pos_s = tab_ref[0:S, :]                                # [S, H]
    pos = jnp.concatenate([pos_s] * B, axis=0)             # [BS, H]
    # Token-type embedding: TYPE_VOCAB == 2, so a linear select is exact.
    t0 = tab_ref[_T_TYPE:_T_TYPE + 1, :]
    t1 = tab_ref[_T_TYPE + 1:_T_TYPE + 2, :]
    typ = t0 + tt_f * (t1 - t0)                            # [BS, H]

    x = layer_norm(word + pos + typ,
                   tab_ref[_T_EMB_G:_T_EMB_G + 1, :],
                   tab_ref[_T_EMB_B:_T_EMB_B + 1, :])      # [BS, H] f32

    # ---- encoder layers (static unroll over the stacked layer dim) ----------
    for l in range(NUM_LAYERS):
        wmat = w3_ref[l]                                   # [H, 3H+H+I] bf16
        vb = vecs_ref[l]                                   # [8, 3H] f32
        b_qkv = vb[0:1, 0:3 * H]
        b_o = vb[1:2, 0:H]
        ln1_g = vb[2:3, 0:H]
        ln1_b = vb[3:4, 0:H]
        b_i = vb[4:5, 0:I]
        b_o2 = vb[5:6, 0:H]
        ln2_g = vb[6:7, 0:H]
        ln2_b = vb[7:8, 0:H]

        # Fused QKV projection (softmax 1/sqrt(d) pre-folded into Q columns).
        qkv = jnp.dot(x.astype(jnp.bfloat16), wmat[:, 0:3 * H],
                      preferred_element_type=jnp.float32) + b_qkv   # [BS, 3H]
        qkvb = qkv.astype(jnp.bfloat16)        # single bf16 cast shared by q/k/v

        # Flat 2-D attention; head outputs stay vreg-resident (no scratch).
        ctx_parts = []
        for h in range(NUM_HEADS):
            lo = h * HEAD_DIM
            qh = qkvb[:, lo:lo + HEAD_DIM]
            kh = qkvb[:, H + lo:H + lo + HEAD_DIM]
            vh = qkvb[:, 2 * H + lo:2 * H + lo + HEAD_DIM]
            s = jax.lax.dot_general(qh, kh, (((1,), (1,)), ((), ())),
                                    preferred_element_type=jnp.float32)  # [BS, BS]
            s = s + attn_bias
            s = s - jnp.max(s, axis=-1, keepdims=True)
            p = jnp.exp(s)
            p = p * pl.reciprocal(jnp.sum(p, axis=-1, keepdims=True),
                                  approx=True)
            ctx_parts.append(jnp.dot(p.astype(jnp.bfloat16), vh,
                                     preferred_element_type=jnp.float32))
        ctx = jnp.concatenate(ctx_parts, axis=-1)          # [BS, H] f32

        # Attention output projection + add & LayerNorm.
        attn_out = jnp.dot(ctx.astype(jnp.bfloat16), wmat[:, 3 * H:4 * H],
                           preferred_element_type=jnp.float32) + b_o
        h1 = layer_norm(attn_out + x, ln1_g, ln1_b)

        # Feed-forward.
        ff = jnp.dot(h1.astype(jnp.bfloat16), wmat[:, 4 * H:4 * H + I],
                     preferred_element_type=jnp.float32) + b_i
        # TODO(synk): HF BERT default GeLU is exact-erf; tanh approximation used.
        ff = jax.nn.gelu(ff, approximate=True)
        ff = jnp.dot(ff.astype(jnp.bfloat16), wo2_ref[l],
                     preferred_element_type=jnp.float32) + b_o2
        x = layer_norm(ff + h1, ln2_g, ln2_b)

    # ---- masked mean-pool via a [B, BS] pooling matmul (no [B,S,H] relayout) -
    pbatch = jax.lax.broadcasted_iota(jnp.int32, (B, BS), 0).astype(jnp.float32)
    wpool = jnp.where(pbatch == kbatch, mask_k, 0.0)        # [B, BS]
    pooled = jnp.dot(wpool.astype(jnp.bfloat16), x.astype(jnp.bfloat16),
                     preferred_element_type=jnp.float32)    # [B, H]
    denom = jnp.sum(wpool, axis=-1, keepdims=True)          # [B, 1]
    avg = pooled / denom                                    # straight divide (torch parity)

    # ---- classifier (bf16 MXU operands) + BCE-with-logits loss --------------
    cls_wT = wordcls_ref[VOCAB_PAD:VOCAB_PAD + NUM_LABELS, :]   # [NUM_LABELS, H] bf16
    cls_b = tab_ref[_T_CLS_B:_T_CLS_B + 1, 0:NUM_LABELS]        # [1, NUM_LABELS]
    logits = jax.lax.dot_general(avg.astype(jnp.bfloat16), cls_wT,
                                 (((1,), (1,)), ((), ())),
                                 preferred_element_type=jnp.float32) + cls_b
    logits_ref[...] = logits

    y = labels_ref[...]
    per = (jnp.maximum(logits, 0.0) - logits * y
           + jnp.log(1.0 + jnp.exp(-jnp.abs(logits))))
    loss_ref[...] = jnp.mean(jnp.mean(per, axis=1, keepdims=True),
                             axis=0, keepdims=True)             # [1, 1]


def _fused_forward(col_meta, row_meta, params, labels_f, B, S):
    kernel = functools.partial(_fused_forward_kernel, B=B, S=S)
    out_shape = (
        jax.ShapeDtypeStruct((B, NUM_LABELS), jnp.float32),   # logits
        jax.ShapeDtypeStruct((1, 1), jnp.float32),            # loss
    )
    # Whole-array blocks (everything is tiny and VMEM-resident); no grid.
    return pl.pallas_call(kernel, out_shape=out_shape)(
        col_meta, row_meta,
        params["word_cls"], params["tab"],
        params["w3"], params["wo2"], params["vecs"],
        labels_f,
    )


# ------------------------------ parameters -----------------------------------
def init_params(key):
    H, I, L = HIDDEN, INTERMEDIATE, NUM_LAYERS
    scale = 1.0 / math.sqrt(HEAD_DIM)
    keys = iter(jax.random.split(key, 10))

    def norm(k, shape):
        return 0.02 * jax.random.normal(k, shape, dtype=jnp.float32)

    word_emb = norm(next(keys), (VOCAB, H))
    pos_emb = norm(next(keys), (MAX_POS, H))
    type_emb = norm(next(keys), (TYPE_VOCAB, H))
    cls_w = norm(next(keys), (H, NUM_LABELS))
    cls_b = jnp.zeros((NUM_LABELS,), jnp.float32)
    emb_ln_g = jnp.ones((H,), jnp.float32)
    emb_ln_b = jnp.zeros((H,), jnp.float32)

    w_q = norm(next(keys), (L, H, H))
    w_k = norm(next(keys), (L, H, H))
    w_v = norm(next(keys), (L, H, H))
    w_o = norm(next(keys), (L, H, H))
    w_i = norm(next(keys), (L, H, I))
    w_o2 = norm(next(keys), (L, I, H))
    b_q = jnp.zeros((L, H), jnp.float32)
    b_k = jnp.zeros((L, H), jnp.float32)
    b_v = jnp.zeros((L, H), jnp.float32)
    b_o = jnp.zeros((L, H), jnp.float32)
    b_i = jnp.zeros((L, I), jnp.float32)
    b_o2 = jnp.zeros((L, H), jnp.float32)
    ln1_g = jnp.ones((L, H), jnp.float32)
    ln1_b = jnp.zeros((L, H), jnp.float32)
    ln2_g = jnp.ones((L, H), jnp.float32)
    ln2_b = jnp.zeros((L, H), jnp.float32)

    # --- pack into the kernel's (few) input arrays ---------------------------
    # Word table zero-padded to 128 lane-aligned rows + classifier weight^T (bf16).
    word_pad = jnp.pad(word_emb, ((0, VOCAB_PAD - VOCAB), (0, 0)))
    word_cls = jnp.concatenate([word_pad, cls_w.T], axis=0).astype(jnp.bfloat16)

    # Small f32 tables: positions | token types | embedding LN | classifier bias.
    cls_b_row = jnp.pad(cls_b[None, :], ((0, 0), (0, H - NUM_LABELS)))
    tab = jnp.concatenate([pos_emb, type_emb, emb_ln_g[None, :],
                           emb_ln_b[None, :], cls_b_row], axis=0)

    # Per-layer weight matrices, lane-concatenated [wqkv | wo | wi], bf16.
    # Softmax 1/sqrt(HEAD_DIM) folded into the Q projection (weight and bias).
    wqkv = jnp.concatenate([w_q * scale, w_k, w_v], axis=-1)      # [L, H, 3H]
    w3 = jnp.concatenate([wqkv, w_o, w_i], axis=-1).astype(jnp.bfloat16)

    # Per-layer f32 vectors (biases + LN params), one sublane row each.
    def row(v):
        return jnp.pad(v, ((0, 0), (0, 3 * H - v.shape[-1])))
    b_qkv = jnp.concatenate([b_q * scale, b_k, b_v], axis=-1)     # [L, 3H]
    vecs = jnp.stack([b_qkv, row(b_o), row(ln1_g), row(ln1_b),
                      row(b_i), row(b_o2), row(ln2_g), row(ln2_b)], axis=1)

    return {
        "word_cls": word_cls,               # [VOCAB_PAD + NUM_LABELS, H] bf16
        "tab": tab,                         # [MAX_POS + TYPE_VOCAB + 3, H] f32
        "w3": w3,                           # [L, H, 3H + H + I] bf16
        "wo2": w_o2.astype(jnp.bfloat16),   # [L, I, H] bf16
        "vecs": vecs,                       # [L, 8, 3H] f32
    }


# -------------------------------- forward ------------------------------------
def bert_multilabel_forward(params, input_ids, attention_mask, token_type_ids,
                            labels=None):
    B, S = input_ids.shape
    batch_idx = jnp.repeat(jnp.arange(B, dtype=jnp.float32), S)    # [B*S]

    # Tiny metadata packing (trivially fused by XLA); everything heavy,
    # including the embedding gather, runs inside the single Pallas kernel.
    col_meta = jnp.stack([input_ids.reshape(-1).astype(jnp.float32),
                          token_type_ids.reshape(-1).astype(jnp.float32),
                          batch_idx], axis=-1)                     # [B*S, 3]
    row_meta = jnp.stack([attention_mask.reshape(-1).astype(jnp.float32),
                          batch_idx], axis=0)                      # [2, B*S]
    labels_f = (labels.astype(jnp.float32) if labels is not None
                else jnp.zeros((B, NUM_LABELS), jnp.float32))

    logits, loss = _fused_forward(col_meta, row_meta, params, labels_f, B, S)

    output = {"logits": logits}
    if labels is not None:
        output["loss"] = loss[0, 0]
    return output


# --------------------------------- main ---------------------------------------
if __name__ == "__main__":
    B, S = 2, 8
    key = jax.random.PRNGKey(0)
    pkey, ikey = jax.random.split(key)

    params = init_params(pkey)
    input_ids = jax.random.randint(ikey, (B, S), 0, VOCAB, dtype=jnp.int32)
    attention_mask = jnp.array(
        [[1, 1, 1, 1, 1, 1, 1, 1],
         [1, 1, 1, 1, 1, 0, 0, 0]], dtype=jnp.int32)
    token_type_ids = jnp.zeros((B, S), dtype=jnp.int32)
    labels = jnp.array([[1, 1], [0, 1]], dtype=jnp.int32)

    fwd = jax.jit(bert_multilabel_forward)
    out = fwd(params, input_ids, attention_mask, token_type_ids, labels)
    jax.block_until_ready(out["logits"])
    jax.block_until_ready(out["loss"])

    assert out["logits"].shape == (B, NUM_LABELS)
    assert out["loss"].shape == ()
    assert bool(jnp.all(jnp.isfinite(out["logits"])))
    assert bool(jnp.isfinite(out["loss"]))
    print("KERNEL_OK")
</pallas_src>

<mosaic_0001>
module attributes {stable_mosaic.version = 11 : i64} {
  func.func @_fused_forward_kernel(%arg0: memref<16x3xf32, #tpu.memory_space<vmem>>, %arg1: memref<2x16xf32, #tpu.memory_space<vmem>>, %arg2: memref<130x32xbf16, #tpu.memory_space<vmem>>, %arg3: memref<21x32xf32, #tpu.memory_space<vmem>>, %arg4: memref<2x32x192xbf16, #tpu.memory_space<vmem>>, %arg5: memref<2x64x32xbf16, #tpu.memory_space<vmem>>, %arg6: memref<2x8x96xf32, #tpu.memory_space<vmem>>, %arg7: memref<2x2xf32, #tpu.memory_space<vmem>>, %arg8: memref<2x2xf32, #tpu.memory_space<vmem>>, %arg9: memref<1x1xf32, #tpu.memory_space<vmem>>) attributes {dimension_semantics = [], scalar_prefetch = 0 : i64, scratch_operands = 0 : i64, tpu.core_type = #tpu.core_type<tc>} {
    %c0 = arith.constant 0 : index
    %c0_0 = arith.constant 0 : index
    %0 = vector.load %arg0[%c0, %c0_0] : memref<16x3xf32, #tpu.memory_space<vmem>>, vector<16x3xf32>
    %1 = vector.extract_strided_slice %0 {offsets = [0, 0], sizes = [16, 1], strides = [1, 1]} : vector<16x3xf32> to vector<16x1xf32>
    %2 = vector.extract_strided_slice %0 {offsets = [0, 1], sizes = [16, 1], strides = [1, 1]} : vector<16x3xf32> to vector<16x1xf32>
    %3 = vector.extract_strided_slice %0 {offsets = [0, 2], sizes = [16, 1], strides = [1, 1]} : vector<16x3xf32> to vector<16x1xf32>
    %c0_1 = arith.constant 0 : index
    %c0_2 = arith.constant 0 : index
    %4 = vector.load %arg1[%c0_1, %c0_2] : memref<2x16xf32, #tpu.memory_space<vmem>>, vector<2x16xf32>
    %5 = vector.extract_strided_slice %4 {offsets = [0, 0], sizes = [1, 16], strides = [1, 1]} : vector<2x16xf32> to vector<1x16xf32>
    %6 = vector.extract_strided_slice %4 {offsets = [1, 0], sizes = [1, 16], strides = [1, 1]} : vector<2x16xf32> to vector<1x16xf32>
    %7 = vector.broadcast %3 : vector<16x1xf32> to vector<16x16xf32>
    %8 = vector.broadcast %6 : vector<1x16xf32> to vector<16x16xf32>
    %9 = arith.cmpf oeq, %7, %8 : vector<16x16xf32>
    %cst = arith.constant 0.000000e+00 : f32
    %10 = vector.shape_cast %5 : vector<1x16xf32> to vector<1x16xf32>
    %11 = vector.broadcast %10 : vector<1x16xf32> to vector<16x16xf32>
    %12 = vector.broadcast %cst : f32 to vector<16x16xf32>
    %13 = arith.select %9, %11, %12 : vector<16x16xi1>, vector<16x16xf32>
    %cst_3 = arith.constant 1.000000e+00 : f32
    %14 = vector.broadcast %cst_3 : f32 to vector<16x16xf32>
    %15 = arith.subf %13, %14 : vector<16x16xf32>
    %cst_4 = arith.constant 1.000000e+09 : f32
    %16 = vector.broadcast %cst_4 : f32 to vector<16x16xf32>
    %17 = arith.mulf %15, %16 : vector<16x16xf32>
    %18 = tpu.iota {dimensions = array<i32: 1>} : vector<16x128xi32>
    %19 = arith.sitofp %18 : vector<16x128xi32> to vector<16x128xf32>
    %20 = vector.broadcast %1 : vector<16x1xf32> to vector<16x128xf32>
    %21 = arith.cmpf oeq, %19, %20 : vector<16x128xf32>
    %22 = arith.extui %21 : vector<16x128xi1> to vector<16x128xi32>
    %23 = arith.sitofp %22 : vector<16x128xi32> to vector<16x128xf32>
    %24 = arith.truncf %23 : vector<16x128xf32> to vector<16x128xbf16>
    %c0_5 = arith.constant 0 : index
    %c0_6 = arith.constant 0 : index
    %25 = vector.load %arg2[%c0_5, %c0_6] : memref<130x32xbf16, #tpu.memory_space<vmem>>, vector<128x32xbf16>
    %cst_7 = arith.constant dense<0.000000e+00> : vector<16x32xf32>
    %26 = tpu.matmul %24, %25, %cst_7 {dimension_numbers = #tpu.dot_dimension_numbers<[1], [0], [0], [1], [0, 0, 1, 1], [], []>} : vector<16x128xbf16>, vector<128x32xbf16>, vector<16x32xf32> -> vector<16x32xf32>
    %c0_8 = arith.constant 0 : index
    %c0_9 = arith.constant 0 : index
    %27 = vector.load %arg3[%c0_8, %c0_9] : memref<21x32xf32, #tpu.memory_space<vmem>>, vector<8x32xf32>
    %28 = tpu.concatenate %27, %27 in 0 : vector<8x32xf32>, vector<8x32xf32> -> vector<16x32xf32>
    %c16 = arith.constant 16 : index
    %c0_10 = arith.constant 0 : index
    %29 = vector.load %arg3[%c16, %c0_10] : memref<21x32xf32, #tpu.memory_space<vmem>>, vector<1x32xf32>
    %c17 = arith.constant 17 : index
    %c0_11 = arith.constant 0 : index
    %30 = vector.load %arg3[%c17, %c0_11] : memref<21x32xf32, #tpu.memory_space<vmem>>, vector<1x32xf32>
    %31 = arith.subf %30, %29 : vector<1x32xf32>
    %32 = vector.broadcast %2 : vector<16x1xf32> to vector<16x32xf32>
    %33 = vector.broadcast %31 : vector<1x32xf32> to vector<16x32xf32>
    %34 = arith.mulf %32, %33 : vector<16x32xf32>
    %35 = vector.broadcast %29 : vector<1x32xf32> to vector<16x32xf32>
    %36 = arith.addf %35, %34 : vector<16x32xf32>
    %37 = arith.addf %26, %28 : vector<16x32xf32>
    %38 = arith.addf %37, %36 : vector<16x32xf32>
    %c18 = arith.constant 18 : index
    %c0_12 = arith.constant 0 : index
    %39 = vector.load %arg3[%c18, %c0_12] : memref<21x32xf32, #tpu.memory_space<vmem>>, vector<1x32xf32>
    %c19 = arith.constant 19 : index
    %c0_13 = arith.constant 0 : index
    %40 = vector.load %arg3[%c19, %c0_13] : memref<21x32xf32, #tpu.memory_space<vmem>>, vector<1x32xf32>
    %cst_14 = arith.constant dense<0.000000e+00> : vector<16xf32>
    %41 = vector.multi_reduction <add>, %38, %cst_14 [1] : vector<16x32xf32> to vector<16xf32>
    %42 = vector.shape_cast %41 : vector<16xf32> to vector<16x1xf32>
    %cst_15 = arith.constant 3.200000e+01 : f32
    %43 = vector.broadcast %cst_15 : f32 to vector<16x1xf32>
    %44 = arith.divf %42, %43 : vector<16x1xf32>
    %45 = vector.broadcast %44 : vector<16x1xf32> to vector<16x32xf32>
    %46 = arith.subf %38, %45 : vector<16x32xf32>
    %47 = arith.mulf %46, %46 : vector<16x32xf32>
    %cst_16 = arith.constant dense<0.000000e+00> : vector<16xf32>
    %48 = vector.multi_reduction <add>, %47, %cst_16 [1] : vector<16x32xf32> to vector<16xf32>
    %49 = vector.shape_cast %48 : vector<16xf32> to vector<16x1xf32>
    %cst_17 = arith.constant 3.200000e+01 : f32
    %50 = vector.broadcast %cst_17 : f32 to vector<16x1xf32>
    %51 = arith.divf %49, %50 : vector<16x1xf32>
    %52 = vector.broadcast %44 : vector<16x1xf32> to vector<16x32xf32>
    %53 = arith.subf %38, %52 : vector<16x32xf32>
    %cst_18 = arith.constant 9.99999996E-13 : f32
    %54 = vector.broadcast %cst_18 : f32 to vector<16x1xf32>
    %55 = arith.addf %51, %54 : vector<16x1xf32>
    %56 = math.rsqrt %55 : vector<16x1xf32>
    %57 = vector.broadcast %56 : vector<16x1xf32> to vector<16x32xf32>
    %58 = arith.mulf %53, %57 : vector<16x32xf32>
    %59 = vector.broadcast %39 : vector<1x32xf32> to vector<16x32xf32>
    %60 = arith.mulf %58, %59 : vector<16x32xf32>
    %61 = vector.broadcast %40 : vector<1x32xf32> to vector<16x32xf32>
    %62 = arith.addf %60, %61 : vector<16x32xf32>
    %c0_19 = arith.constant 0 : index
    %c0_20 = arith.constant 0 : index
    %c0_21 = arith.constant 0 : index
    %63 = vector.load %arg4[%c0_19, %c0_20, %c0_21] : memref<2x32x192xbf16, #tpu.memory_space<vmem>>, vector<1x32x192xbf16>
    %64 = vector.shape_cast %63 : vector<1x32x192xbf16> to vector<32x192xbf16>
    %c0_22 = arith.constant 0 : index
    %c0_23 = arith.constant 0 : index
    %c0_24 = arith.constant 0 : index
    %65 = vector.load %arg6[%c0_22, %c0_23, %c0_24] : memref<2x8x96xf32, #tpu.memory_space<vmem>>, vector<1x8x96xf32>
    %66 = vector.shape_cast %65 : vector<1x8x96xf32> to vector<8x96xf32>
    %67 = vector.extract_strided_slice %66 {offsets = [0, 0], sizes = [1, 96], strides = [1, 1]} : vector<8x96xf32> to vector<1x96xf32>
    %68 = vector.extract_strided_slice %66 {offsets = [1, 0], sizes = [1, 32], strides = [1, 1]} : vector<8x96xf32> to vector<1x32xf32>
    %69 = vector.extract_strided_slice %66 {offsets = [2, 0], sizes = [1, 32], strides = [1, 1]} : vector<8x96xf32> to vector<1x32xf32>
    %70 = vector.extract_strided_slice %66 {offsets = [3, 0], sizes = [1, 32], strides = [1, 1]} : vector<8x96xf32> to vector<1x32xf32>
    %71 = vector.extract_strided_slice %66 {offsets = [4, 0], sizes = [1, 64], strides = [1, 1]} : vector<8x96xf32> to vector<1x64xf32>
    %72 = vector.extract_strided_slice %66 {offsets = [5, 0], sizes = [1, 32], strides = [1, 1]} : vector<8x96xf32> to vector<1x32xf32>
    %73 = vector.extract_strided_slice %66 {offsets = [6, 0], sizes = [1, 32], strides = [1, 1]} : vector<8x96xf32> to vector<1x32xf32>
    %74 = vector.extract_strided_slice %66 {offsets = [7, 0], sizes = [1, 32], strides = [1, 1]} : vector<8x96xf32> to vector<1x32xf32>
    %75 = arith.truncf %62 : vector<16x32xf32> to vector<16x32xbf16>
    %76 = vector.extract_strided_slice %64 {offsets = [0, 0], sizes = [32, 96], strides = [1, 1]} : vector<32x192xbf16> to vector<32x96xbf16>
    %cst_25 = arith.constant dense<0.000000e+00> : vector<16x96xf32>
    %77 = tpu.matmul %75, %76, %cst_25 {dimension_numbers = #tpu.dot_dimension_numbers<[1], [0], [0], [1], [0, 0, 1, 1], [], []>} : vector<16x32xbf16>, vector<32x96xbf16>, vector<16x96xf32> -> vector<16x96xf32>
    %78 = vector.broadcast %67 : vector<1x96xf32> to vector<16x96xf32>
    %79 = arith.addf %77, %78 : vector<16x96xf32>
    %80 = arith.truncf %79 : vector<16x96xf32> to vector<16x96xbf16>
    %81 = vector.extract_strided_slice %80 {offsets = [0, 0], sizes = [16, 16], strides = [1, 1]} : vector<16x96xbf16> to vector<16x16xbf16>
    %82 = vector.extract_strided_slice %80 {offsets = [0, 32], sizes = [16, 16], strides = [1, 1]} : vector<16x96xbf16> to vector<16x16xbf16>
    %83 = vector.extract_strided_slice %80 {offsets = [0, 64], sizes = [16, 16], strides = [1, 1]} : vector<16x96xbf16> to vector<16x16xbf16>
    %cst_26 = arith.constant dense<0.000000e+00> : vector<16x16xf32>
    %84 = tpu.matmul %81, %82, %cst_26 {dimension_numbers = #tpu.dot_dimension_numbers<[1], [1], [0], [0], [0, 0, 1, 0], [], []>} : vector<16x16xbf16>, vector<16x16xbf16>, vector<16x16xf32> -> vector<16x16xf32>
    %85 = arith.addf %84, %17 : vector<16x16xf32>
    %cst_27 = arith.constant dense<0xFF800000> : vector<16xf32>
    %86 = vector.multi_reduction <maximumf>, %85, %cst_27 [1] : vector<16x16xf32> to vector<16xf32>
    %87 = vector.shape_cast %86 : vector<16xf32> to vector<16x1xf32>
    %88 = vector.broadcast %87 : vector<16x1xf32> to vector<16x16xf32>
    %89 = arith.subf %85, %88 : vector<16x16xf32>
    %90 = math.exp %89 : vector<16x16xf32>
    %cst_28 = arith.constant dense<0.000000e+00> : vector<16xf32>
    %91 = vector.multi_reduction <add>, %90, %cst_28 [1] : vector<16x16xf32> to vector<16xf32>
    %92 = vector.shape_cast %91 : vector<16xf32> to vector<16x1xf32>
    %93 = tpu.reciprocal %92 {approx = true} : vector<16x1xf32> -> vector<16x1xf32>
    %94 = vector.broadcast %93 : vector<16x1xf32> to vector<16x16xf32>
    %95 = arith.mulf %90, %94 : vector<16x16xf32>
    %96 = arith.truncf %95 : vector<16x16xf32> to vector<16x16xbf16>
    %cst_29 = arith.constant dense<0.000000e+00> : vector<16x16xf32>
    %97 = tpu.matmul %96, %83, %cst_29 {dimension_numbers = #tpu.dot_dimension_numbers<[1], [0], [0], [1], [0, 0, 1, 1], [], []>} : vector<16x16xbf16>, vector<16x16xbf16>, vector<16x16xf32> -> vector<16x16xf32>
    %98 = vector.extract_strided_slice %80 {offsets = [0, 16], sizes = [16, 16], strides = [1, 1]} : vector<16x96xbf16> to vector<16x16xbf16>
    %99 = vector.extract_strided_slice %80 {offsets = [0, 48], sizes = [16, 16], strides = [1, 1]} : vector<16x96xbf16> to vector<16x16xbf16>
    %100 = vector.extract_strided_slice %80 {offsets = [0, 80], sizes = [16, 16], strides = [1, 1]} : vector<16x96xbf16> to vector<16x16xbf16>
    %cst_30 = arith.constant dense<0.000000e+00> : vector<16x16xf32>
    %101 = tpu.matmul %98, %99, %cst_30 {dimension_numbers = #tpu.dot_dimension_numbers<[1], [1], [0], [0], [0, 0, 1, 0], [], []>} : vector<16x16xbf16>, vector<16x16xbf16>, vector<16x16xf32> -> vector<16x16xf32>
    %102 = arith.addf %101, %17 : vector<16x16xf32>
    %cst_31 = arith.constant dense<0xFF800000> : vector<16xf32>
    %103 = vector.multi_reduction <maximumf>, %102, %cst_31 [1] : vector<16x16xf32> to vector<16xf32>
    %104 = vector.shape_cast %103 : vector<16xf32> to vector<16x1xf32>
    %105 = vector.broadcast %104 : vector<16x1xf32> to vector<16x16xf32>
    %106 = arith.subf %102, %105 : vector<16x16xf32>
    %107 = math.exp %106 : vector<16x16xf32>
    %cst_32 = arith.constant dense<0.000000e+00> : vector<16xf32>
    %108 = vector.multi_reduction <add>, %107, %cst_32 [1] : vector<16x16xf32> to vector<16xf32>
    %109 = vector.shape_cast %108 : vector<16xf32> to vector<16x1xf32>
    %110 = tpu.reciprocal %109 {approx = true} : vector<16x1xf32> -> vector<16x1xf32>
    %111 = vector.broadcast %110 : vector<16x1xf32> to vector<16x16xf32>
    %112 = arith.mulf %107, %111 : vector<16x16xf32>
    %113 = arith.truncf %112 : vector<16x16xf32> to vector<16x16xbf16>
    %cst_33 = arith.constant dense<0.000000e+00> : vector<16x16xf32>
    %114 = tpu.matmul %113, %100, %cst_33 {dimension_numbers = #tpu.dot_dimension_numbers<[1], [0], [0], [1], [0, 0, 1, 1], [], []>} : vector<16x16xbf16>, vector<16x16xbf16>, vector<16x16xf32> -> vector<16x16xf32>
    %115 = tpu.concatenate %97, %114 in 1 : vector<16x16xf32>, vector<16x16xf32> -> vector<16x32xf32>
    %116 = arith.truncf %115 : vector<16x32xf32> to vector<16x32xbf16>
    %117 = vector.extract_strided_slice %64 {offsets = [0, 96], sizes = [32, 32], strides = [1, 1]} : vector<32x192xbf16> to vector<32x32xbf16>
    %cst_34 = arith.constant dense<0.000000e+00> : vector<16x32xf32>
    %118 = tpu.matmul %116, %117, %cst_34 {dimension_numbers = #tpu.dot_dimension_numbers<[1], [0], [0], [1], [0, 0, 1, 1], [], []>} : vector<16x32xbf16>, vector<32x32xbf16>, vector<16x32xf32> -> vector<16x32xf32>
    %119 = vector.broadcast %68 : vector<1x32xf32> to vector<16x32xf32>
    %120 = arith.addf %118, %119 : vector<16x32xf32>
    %121 = arith.addf %120, %62 : vector<16x32xf32>
    %cst_35 = arith.constant dense<0.000000e+00> : vector<16xf32>
    %122 = vector.multi_reduction <add>, %121, %cst_35 [1] : vector<16x32xf32> to vector<16xf32>
    %123 = vector.shape_cast %122 : vector<16xf32> to vector<16x1xf32>
    %cst_36 = arith.constant 3.200000e+01 : f32
    %124 = vector.broadcast %cst_36 : f32 to vector<16x1xf32>
    %125 = arith.divf %123, %124 : vector<16x1xf32>
    %126 = vector.broadcast %125 : vector<16x1xf32> to vector<16x32xf32>
    %127 = arith.subf %121, %126 : vector<16x32xf32>
    %128 = arith.mulf %127, %127 : vector<16x32xf32>
    %cst_37 = arith.constant dense<0.000000e+00> : vector<16xf32>
    %129 = vector.multi_reduction <add>, %128, %cst_37 [1] : vector<16x32xf32> to vector<16xf32>
    %130 = vector.shape_cast %129 : vector<16xf32> to vector<16x1xf32>
    %cst_38 = arith.constant 3.200000e+01 : f32
    %131 = vector.broadcast %cst_38 : f32 to vector<16x1xf32>
    %132 = arith.divf %130, %131 : vector<16x1xf32>
    %133 = vector.broadcast %125 : vector<16x1xf32> to vector<16x32xf32>
    %134 = arith.subf %121, %133 : vector<16x32xf32>
    %cst_39 = arith.constant 9.99999996E-13 : f32
    %135 = vector.broadcast %cst_39 : f32 to vector<16x1xf32>
    %136 = arith.addf %132, %135 : vector<16x1xf32>
    %137 = math.rsqrt %136 : vector<16x1xf32>
    %138 = vector.broadcast %137 : vector<16x1xf32> to vector<16x32xf32>
    %139 = arith.mulf %134, %138 : vector<16x32xf32>
    %140 = vector.broadcast %69 : vector<1x32xf32> to vector<16x32xf32>
    %141 = arith.mulf %139, %140 : vector<16x32xf32>
    %142 = vector.broadcast %70 : vector<1x32xf32> to vector<16x32xf32>
    %143 = arith.addf %141, %142 : vector<16x32xf32>
    %144 = arith.truncf %143 : vector<16x32xf32> to vector<16x32xbf16>
    %145 = vector.extract_strided_slice %64 {offsets = [0, 128], sizes = [32, 64], strides = [1, 1]} : vector<32x192xbf16> to vector<32x64xbf16>
    %cst_40 = arith.constant dense<0.000000e+00> : vector<16x64xf32>
    %146 = tpu.matmul %144, %145, %cst_40 {dimension_numbers = #tpu.dot_dimension_numbers<[1], [0], [0], [1], [0, 0, 1, 1], [], []>} : vector<16x32xbf16>, vector<32x64xbf16>, vector<16x64xf32> -> vector<16x64xf32>
    %147 = vector.broadcast %71 : vector<1x64xf32> to vector<16x64xf32>
    %148 = arith.addf %146, %147 : vector<16x64xf32>
    %149 = arith.mulf %148, %148 : vector<16x64xf32>
    %150 = arith.mulf %148, %149 : vector<16x64xf32>
    %cst_41 = arith.constant 4.471500e-02 : f32
    %151 = vector.broadcast %cst_41 : f32 to vector<16x64xf32>
    %152 = arith.mulf %151, %150 : vector<16x64xf32>
    %153 = arith.addf %148, %152 : vector<16x64xf32>
    %cst_42 = arith.constant 0.797884583 : f32
    %154 = vector.broadcast %cst_42 : f32 to vector<16x64xf32>
    %155 = arith.mulf %154, %153 : vector<16x64xf32>
    %156 = math.tanh %155 : vector<16x64xf32>
    %cst_43 = arith.constant 1.000000e+00 : f32
    %157 = vector.broadcast %cst_43 : f32 to vector<16x64xf32>
    %158 = arith.addf %157, %156 : vector<16x64xf32>
    %cst_44 = arith.constant 5.000000e-01 : f32
    %159 = vector.broadcast %cst_44 : f32 to vector<16x64xf32>
    %160 = arith.mulf %159, %158 : vector<16x64xf32>
    %161 = arith.mulf %148, %160 : vector<16x64xf32>
    %162 = arith.truncf %161 : vector<16x64xf32> to vector<16x64xbf16>
    %c0_45 = arith.constant 0 : index
    %c0_46 = arith.constant 0 : index
    %c0_47 = arith.constant 0 : index
    %163 = vector.load %arg5[%c0_45, %c0_46, %c0_47] : memref<2x64x32xbf16, #tpu.memory_space<vmem>>, vector<1x64x32xbf16>
    %164 = vector.shape_cast %163 : vector<1x64x32xbf16> to vector<64x32xbf16>
    %cst_48 = arith.constant dense<0.000000e+00> : vector<16x32xf32>
    %165 = tpu.matmul %162, %164, %cst_48 {dimension_numbers = #tpu.dot_dimension_numbers<[1], [0], [0], [1], [0, 0, 1, 1], [], []>} : vector<16x64xbf16>, vector<64x32xbf16>, vector<16x32xf32> -> vector<16x32xf32>
    %166 = vector.broadcast %72 : vector<1x32xf32> to vector<16x32xf32>
    %167 = arith.addf %165, %166 : vector<16x32xf32>
    %168 = arith.addf %167, %143 : vector<16x32xf32>
    %cst_49 = arith.constant dense<0.000000e+00> : vector<16xf32>
    %169 = vector.multi_reduction <add>, %168, %cst_49 [1] : vector<16x32xf32> to vector<16xf32>
    %170 = vector.shape_cast %169 : vector<16xf32> to vector<16x1xf32>
    %cst_50 = arith.constant 3.200000e+01 : f32
    %171 = vector.broadcast %cst_50 : f32 to vector<16x1xf32>
    %172 = arith.divf %170, %171 : vector<16x1xf32>
    %173 = vector.broadcast %172 : vector<16x1xf32> to vector<16x32xf32>
    %174 = arith.subf %168, %173 : vector<16x32xf32>
    %175 = arith.mulf %174, %174 : vector<16x32xf32>
    %cst_51 = arith.constant dense<0.000000e+00> : vector<16xf32>
    %176 = vector.multi_reduction <add>, %175, %cst_51 [1] : vector<16x32xf32> to vector<16xf32>
    %177 = vector.shape_cast %176 : vector<16xf32> to vector<16x1xf32>
    %cst_52 = arith.constant 3.200000e+01 : f32
    %178 = vector.broadcast %cst_52 : f32 to vector<16x1xf32>
    %179 = arith.divf %177, %178 : vector<16x1xf32>
    %180 = vector.broadcast %172 : vector<16x1xf32> to vector<16x32xf32>
    %181 = arith.subf %168, %180 : vector<16x32xf32>
    %cst_53 = arith.constant 9.99999996E-13 : f32
    %182 = vector.broadcast %cst_53 : f32 to vector<16x1xf32>
    %183 = arith.addf %179, %182 : vector<16x1xf32>
    %184 = math.rsqrt %183 : vector<16x1xf32>
    %185 = vector.broadcast %184 : vector<16x1xf32> to vector<16x32xf32>
    %186 = arith.mulf %181, %185 : vector<16x32xf32>
    %187 = vector.broadcast %73 : vector<1x32xf32> to vector<16x32xf32>
    %188 = arith.mulf %186, %187 : vector<16x32xf32>
    %189 = vector.broadcast %74 : vector<1x32xf32> to vector<16x32xf32>
    %190 = arith.addf %188, %189 : vector<16x32xf32>
    %c1 = arith.constant 1 : index
    %c0_54 = arith.constant 0 : index
    %c0_55 = arith.constant 0 : index
    %191 = vector.load %arg4[%c1, %c0_54, %c0_55] : memref<2x32x192xbf16, #tpu.memory_space<vmem>>, vector<1x32x192xbf16>
    %192 = vector.shape_cast %191 : vector<1x32x192xbf16> to vector<32x192xbf16>
    %c1_56 = arith.constant 1 : index
    %c0_57 = arith.constant 0 : index
    %c0_58 = arith.constant 0 : index
    %193 = vector.load %arg6[%c1_56, %c0_57, %c0_58] : memref<2x8x96xf32, #tpu.memory_space<vmem>>, vector<1x8x96xf32>
    %194 = vector.shape_cast %193 : vector<1x8x96xf32> to vector<8x96xf32>
    %195 = vector.extract_strided_slice %194 {offsets = [0, 0], sizes = [1, 96], strides = [1, 1]} : vector<8x96xf32> to vector<1x96xf32>
    %196 = vector.extract_strided_slice %194 {offsets = [1, 0], sizes = [1, 32], strides = [1, 1]} : vector<8x96xf32> to vector<1x32xf32>
    %197 = vector.extract_strided_slice %194 {offsets = [2, 0], sizes = [1, 32], strides = [1, 1]} : vector<8x96xf32> to vector<1x32xf32>
    %198 = vector.extract_strided_slice %194 {offsets = [3, 0], sizes = [1, 32], strides = [1, 1]} : vector<8x96xf32> to vector<1x32xf32>
    %199 = vector.extract_strided_slice %194 {offsets = [4, 0], sizes = [1, 64], strides = [1, 1]} : vector<8x96xf32> to vector<1x64xf32>
    %200 = vector.extract_strided_slice %194 {offsets = [5, 0], sizes = [1, 32], strides = [1, 1]} : vector<8x96xf32> to vector<1x32xf32>
    %201 = vector.extract_strided_slice %194 {offsets = [6, 0], sizes = [1, 32], strides = [1, 1]} : vector<8x96xf32> to vector<1x32xf32>
    %202 = vector.extract_strided_slice %194 {offsets = [7, 0], sizes = [1, 32], strides = [1, 1]} : vector<8x96xf32> to vector<1x32xf32>
    %203 = arith.truncf %190 : vector<16x32xf32> to vector<16x32xbf16>
    %204 = vector.extract_strided_slice %192 {offsets = [0, 0], sizes = [32, 96], strides = [1, 1]} : vector<32x192xbf16> to vector<32x96xbf16>
    %cst_59 = arith.constant dense<0.000000e+00> : vector<16x96xf32>
    %205 = tpu.matmul %203, %204, %cst_59 {dimension_numbers = #tpu.dot_dimension_numbers<[1], [0], [0], [1], [0, 0, 1, 1], [], []>} : vector<16x32xbf16>, vector<32x96xbf16>, vector<16x96xf32> -> vector<16x96xf32>
    %206 = vector.broadcast %195 : vector<1x96xf32> to vector<16x96xf32>
    %207 = arith.addf %205, %206 : vector<16x96xf32>
    %208 = arith.truncf %207 : vector<16x96xf32> to vector<16x96xbf16>
    %209 = vector.extract_strided_slice %208 {offsets = [0, 0], sizes = [16, 16], strides = [1, 1]} : vector<16x96xbf16> to vector<16x16xbf16>
    %210 = vector.extract_strided_slice %208 {offsets = [0, 32], sizes = [16, 16], strides = [1, 1]} : vector<16x96xbf16> to vector<16x16xbf16>
    %211 = vector.extract_strided_slice %208 {offsets = [0, 64], sizes = [16, 16], strides = [1, 1]} : vector<16x96xbf16> to vector<16x16xbf16>
    %cst_60 = arith.constant dense<0.000000e+00> : vector<16x16xf32>
    %212 = tpu.matmul %209, %210, %cst_60 {dimension_numbers = #tpu.dot_dimension_numbers<[1], [1], [0], [0], [0, 0, 1, 0], [], []>} : vector<16x16xbf16>, vector<16x16xbf16>, vector<16x16xf32> -> vector<16x16xf32>
    %213 = arith.addf %212, %17 : vector<16x16xf32>
    %cst_61 = arith.constant dense<0xFF800000> : vector<16xf32>
    %214 = vector.multi_reduction <maximumf>, %213, %cst_61 [1] : vector<16x16xf32> to vector<16xf32>
    %215 = vector.shape_cast %214 : vector<16xf32> to vector<16x1xf32>
    %216 = vector.broadcast %215 : vector<16x1xf32> to vector<16x16xf32>
    %217 = arith.subf %213, %216 : vector<16x16xf32>
    %218 = math.exp %217 : vector<16x16xf32>
    %cst_62 = arith.constant dense<0.000000e+00> : vector<16xf32>
    %219 = vector.multi_reduction <add>, %218, %cst_62 [1] : vector<16x16xf32> to vector<16xf32>
    %220 = vector.shape_cast %219 : vector<16xf32> to vector<16x1xf32>
    %221 = tpu.reciprocal %220 {approx = true} : vector<16x1xf32> -> vector<16x1xf32>
    %222 = vector.broadcast %221 : vector<16x1xf32> to vector<16x16xf32>
    %223 = arith.mulf %218, %222 : vector<16x16xf32>
    %224 = arith.truncf %223 : vector<16x16xf32> to vector<16x16xbf16>
    %cst_63 = arith.constant dense<0.000000e+00> : vector<16x16xf32>
    %225 = tpu.matmul %224, %211, %cst_63 {dimension_numbers = #tpu.dot_dimension_numbers<[1], [0], [0], [1], [0, 0, 1, 1], [], []>} : vector<16x16xbf16>, vector<16x16xbf16>, vector<16x16xf32> -> vector<16x16xf32>
    %226 = vector.extract_strided_slice %208 {offsets = [0, 16], sizes = [16, 16], strides = [1, 1]} : vector<16x96xbf16> to vector<16x16xbf16>
    %227 = vector.extract_strided_slice %208 {offsets = [0, 48], sizes = [16, 16], strides = [1, 1]} : vector<16x96xbf16> to vector<16x16xbf16>
    %228 = vector.extract_strided_slice %208 {offsets = [0, 80], sizes = [16, 16], strides = [1, 1]} : vector<16x96xbf16> to vector<16x16xbf16>
    %cst_64 = arith.constant dense<0.000000e+00> : vector<16x16xf32>
    %229 = tpu.matmul %226, %227, %cst_64 {dimension_numbers = #tpu.dot_dimension_numbers<[1], [1], [0], [0], [0, 0, 1, 0], [], []>} : vector<16x16xbf16>, vector<16x16xbf16>, vector<16x16xf32> -> vector<16x16xf32>
    %230 = arith.addf %229, %17 : vector<16x16xf32>
    %cst_65 = arith.constant dense<0xFF800000> : vector<16xf32>
    %231 = vector.multi_reduction <maximumf>, %230, %cst_65 [1] : vector<16x16xf32> to vector<16xf32>
    %232 = vector.shape_cast %231 : vector<16xf32> to vector<16x1xf32>
    %233 = vector.broadcast %232 : vector<16x1xf32> to vector<16x16xf32>
    %234 = arith.subf %230, %233 : vector<16x16xf32>
    %235 = math.exp %234 : vector<16x16xf32>
    %cst_66 = arith.constant dense<0.000000e+00> : vector<16xf32>
    %236 = vector.multi_reduction <add>, %235, %cst_66 [1] : vector<16x16xf32> to vector<16xf32>
    %237 = vector.shape_cast %236 : vector<16xf32> to vector<16x1xf32>
    %238 = tpu.reciprocal %237 {approx = true} : vector<16x1xf32> -> vector<16x1xf32>
    %239 = vector.broadcast %238 : vector<16x1xf32> to vector<16x16xf32>
    %240 = arith.mulf %235, %239 : vector<16x16xf32>
    %241 = arith.truncf %240 : vector<16x16xf32> to vector<16x16xbf16>
    %cst_67 = arith.constant dense<0.000000e+00> : vector<16x16xf32>
    %242 = tpu.matmul %241, %228, %cst_67 {dimension_numbers = #tpu.dot_dimension_numbers<[1], [0], [0], [1], [0, 0, 1, 1], [], []>} : vector<16x16xbf16>, vector<16x16xbf16>, vector<16x16xf32> -> vector<16x16xf32>
    %243 = tpu.concatenate %225, %242 in 1 : vector<16x16xf32>, vector<16x16xf32> -> vector<16x32xf32>
    %244 = arith.truncf %243 : vector<16x32xf32> to vector<16x32xbf16>
    %245 = vector.extract_strided_slice %192 {offsets = [0, 96], sizes = [32, 32], strides = [1, 1]} : vector<32x192xbf16> to vector<32x32xbf16>
    %cst_68 = arith.constant dense<0.000000e+00> : vector<16x32xf32>
    %246 = tpu.matmul %244, %245, %cst_68 {dimension_numbers = #tpu.dot_dimension_numbers<[1], [0], [0], [1], [0, 0, 1, 1], [], []>} : vector<16x32xbf16>, vector<32x32xbf16>, vector<16x32xf32> -> vector<16x32xf32>
    %247 = vector.broadcast %196 : vector<1x32xf32> to vector<16x32xf32>
    %248 = arith.addf %246, %247 : vector<16x32xf32>
    %249 = arith.addf %248, %190 : vector<16x32xf32>
    %cst_69 = arith.constant dense<0.000000e+00> : vector<16xf32>
    %250 = vector.multi_reduction <add>, %249, %cst_69 [1] : vector<16x32xf32> to vector<16xf32>
    %251 = vector.shape_cast %250 : vector<16xf32> to vector<16x1xf32>
    %cst_70 = arith.constant 3.200000e+01 : f32
    %252 = vector.broadcast %cst_70 : f32 to vector<16x1xf32>
    %253 = arith.divf %251, %252 : vector<16x1xf32>
    %254 = vector.broadcast %253 : vector<16x1xf32> to vector<16x32xf32>
    %255 = arith.subf %249, %254 : vector<16x32xf32>
    %256 = arith.mulf %255, %255 : vector<16x32xf32>
    %cst_71 = arith.constant dense<0.000000e+00> : vector<16xf32>
    %257 = vector.multi_reduction <add>, %256, %cst_71 [1] : vector<16x32xf32> to vector<16xf32>
    %258 = vector.shape_cast %257 : vector<16xf32> to vector<16x1xf32>
    %cst_72 = arith.constant 3.200000e+01 : f32
    %259 = vector.broadcast %cst_72 : f32 to vector<16x1xf32>
    %260 = arith.divf %258, %259 : vector<16x1xf32>
    %261 = vector.broadcast %253 : vector<16x1xf32> to vector<16x32xf32>
    %262 = arith.subf %249, %261 : vector<16x32xf32>
    %cst_73 = arith.constant 9.99999996E-13 : f32
    %263 = vector.broadcast %cst_73 : f32 to vector<16x1xf32>
    %264 = arith.addf %260, %263 : vector<16x1xf32>
    %265 = math.rsqrt %264 : vector<16x1xf32>
    %266 = vector.broadcast %265 : vector<16x1xf32> to vector<16x32xf32>
    %267 = arith.mulf %262, %266 : vector<16x32xf32>
    %268 = vector.broadcast %197 : vector<1x32xf32> to vector<16x32xf32>
    %269 = arith.mulf %267, %268 : vector<16x32xf32>
    %270 = vector.broadcast %198 : vector<1x32xf32> to vector<16x32xf32>
    %271 = arith.addf %269, %270 : vector<16x32xf32>
    %272 = arith.truncf %271 : vector<16x32xf32> to vector<16x32xbf16>
    %273 = vector.extract_strided_slice %192 {offsets = [0, 128], sizes = [32, 64], strides = [1, 1]} : vector<32x192xbf16> to vector<32x64xbf16>
    %cst_74 = arith.constant dense<0.000000e+00> : vector<16x64xf32>
    %274 = tpu.matmul %272, %273, %cst_74 {dimension_numbers = #tpu.dot_dimension_numbers<[1], [0], [0], [1], [0, 0, 1, 1], [], []>} : vector<16x32xbf16>, vector<32x64xbf16>, vector<16x64xf32> -> vector<16x64xf32>
    %275 = vector.broadcast %199 : vector<1x64xf32> to vector<16x64xf32>
    %276 = arith.addf %274, %275 : vector<16x64xf32>
    %277 = arith.mulf %276, %276 : vector<16x64xf32>
    %278 = arith.mulf %276, %277 : vector<16x64xf32>
    %cst_75 = arith.constant 4.471500e-02 : f32
    %279 = vector.broadcast %cst_75 : f32 to vector<16x64xf32>
    %280 = arith.mulf %279, %278 : vector<16x64xf32>
    %281 = arith.addf %276, %280 : vector<16x64xf32>
    %cst_76 = arith.constant 0.797884583 : f32
    %282 = vector.broadcast %cst_76 : f32 to vector<16x64xf32>
    %283 = arith.mulf %282, %281 : vector<16x64xf32>
    %284 = math.tanh %283 : vector<16x64xf32>
    %cst_77 = arith.constant 1.000000e+00 : f32
    %285 = vector.broadcast %cst_77 : f32 to vector<16x64xf32>
    %286 = arith.addf %285, %284 : vector<16x64xf32>
    %cst_78 = arith.constant 5.000000e-01 : f32
    %287 = vector.broadcast %cst_78 : f32 to vector<16x64xf32>
    %288 = arith.mulf %287, %286 : vector<16x64xf32>
    %289 = arith.mulf %276, %288 : vector<16x64xf32>
    %290 = arith.truncf %289 : vector<16x64xf32> to vector<16x64xbf16>
    %c1_79 = arith.constant 1 : index
    %c0_80 = arith.constant 0 : index
    %c0_81 = arith.constant 0 : index
    %291 = vector.load %arg5[%c1_79, %c0_80, %c0_81] : memref<2x64x32xbf16, #tpu.memory_space<vmem>>, vector<1x64x32xbf16>
    %292 = vector.shape_cast %291 : vector<1x64x32xbf16> to vector<64x32xbf16>
    %cst_82 = arith.constant dense<0.000000e+00> : vector<16x32xf32>
    %293 = tpu.matmul %290, %292, %cst_82 {dimension_numbers = #tpu.dot_dimension_numbers<[1], [0], [0], [1], [0, 0, 1, 1], [], []>} : vector<16x64xbf16>, vector<64x32xbf16>, vector<16x32xf32> -> vector<16x32xf32>
    %294 = vector.broadcast %200 : vector<1x32xf32> to vector<16x32xf32>
    %295 = arith.addf %293, %294 : vector<16x32xf32>
    %296 = arith.addf %295, %271 : vector<16x32xf32>
    %cst_83 = arith.constant dense<0.000000e+00> : vector<16xf32>
    %297 = vector.multi_reduction <add>, %296, %cst_83 [1] : vector<16x32xf32> to vector<16xf32>
    %298 = vector.shape_cast %297 : vector<16xf32> to vector<16x1xf32>
    %cst_84 = arith.constant 3.200000e+01 : f32
    %299 = vector.broadcast %cst_84 : f32 to vector<16x1xf32>
    %300 = arith.divf %298, %299 : vector<16x1xf32>
    %301 = vector.broadcast %300 : vector<16x1xf32> to vector<16x32xf32>
    %302 = arith.subf %296, %301 : vector<16x32xf32>
    %303 = arith.mulf %302, %302 : vector<16x32xf32>
    %cst_85 = arith.constant dense<0.000000e+00> : vector<16xf32>
    %304 = vector.multi_reduction <add>, %303, %cst_85 [1] : vector<16x32xf32> to vector<16xf32>
    %305 = vector.shape_cast %304 : vector<16xf32> to vector<16x1xf32>
    %cst_86 = arith.constant 3.200000e+01 : f32
    %306 = vector.broadcast %cst_86 : f32 to vector<16x1xf32>
    %307 = arith.divf %305, %306 : vector<16x1xf32>
    %308 = vector.broadcast %300 : vector<16x1xf32> to vector<16x32xf32>
    %309 = arith.subf %296, %308 : vector<16x32xf32>
    %cst_87 = arith.constant 9.99999996E-13 : f32
    %310 = vector.broadcast %cst_87 : f32 to vector<16x1xf32>
    %311 = arith.addf %307, %310 : vector<16x1xf32>
    %312 = math.rsqrt %311 : vector<16x1xf32>
    %313 = vector.broadcast %312 : vector<16x1xf32> to vector<16x32xf32>
    %314 = arith.mulf %309, %313 : vector<16x32xf32>
    %315 = vector.broadcast %201 : vector<1x32xf32> to vector<16x32xf32>
    %316 = arith.mulf %314, %315 : vector<16x32xf32>
    %317 = vector.broadcast %202 : vector<1x32xf32> to vector<16x32xf32>
    %318 = arith.addf %316, %317 : vector<16x32xf32>
    %319 = tpu.iota {dimensions = array<i32: 0>} : vector<2x16xi32>
    %320 = arith.sitofp %319 : vector<2x16xi32> to vector<2x16xf32>
    %321 = vector.broadcast %6 : vector<1x16xf32> to vector<2x16xf32>
    %322 = arith.cmpf oeq, %320, %321 : vector<2x16xf32>
    %cst_88 = arith.constant 0.000000e+00 : f32
    %323 = vector.shape_cast %5 : vector<1x16xf32> to vector<1x16xf32>
    %324 = vector.broadcast %323 : vector<1x16xf32> to vector<2x16xf32>
    %325 = vector.broadcast %cst_88 : f32 to vector<2x16xf32>
    %326 = arith.select %322, %324, %325 : vector<2x16xi1>, vector<2x16xf32>
    %327 = arith.truncf %326 : vector<2x16xf32> to vector<2x16xbf16>
    %328 = arith.truncf %318 : vector<16x32xf32> to vector<16x32xbf16>
    %cst_89 = arith.constant dense<0.000000e+00> : vector<2x32xf32>
    %329 = tpu.matmul %327, %328, %cst_89 {dimension_numbers = #tpu.dot_dimension_numbers<[1], [0], [0], [1], [0, 0, 1, 1], [], []>} : vector<2x16xbf16>, vector<16x32xbf16>, vector<2x32xf32> -> vector<2x32xf32>
    %cst_90 = arith.constant dense<0.000000e+00> : vector<2xf32>
    %330 = vector.multi_reduction <add>, %326, %cst_90 [1] : vector<2x16xf32> to vector<2xf32>
    %331 = vector.shape_cast %330 : vector<2xf32> to vector<2x1xf32>
    %332 = vector.broadcast %331 : vector<2x1xf32> to vector<2x32xf32>
    %333 = arith.divf %329, %332 : vector<2x32xf32>
    %c128 = arith.constant 128 : index
    %c0_91 = arith.constant 0 : index
    %334 = vector.load %arg2[%c128, %c0_91] : memref<130x32xbf16, #tpu.memory_space<vmem>>, vector<2x32xbf16>
    %c20 = arith.constant 20 : index
    %c0_92 = arith.constant 0 : index
    %335 = vector.load %arg3[%c20, %c0_92] : memref<21x32xf32, #tpu.memory_space<vmem>>, vector<1x2xf32>
    %336 = arith.truncf %333 : vector<2x32xf32> to vector<2x32xbf16>
    %cst_93 = arith.constant dense<0.000000e+00> : vector<2x2xf32>
    %337 = tpu.matmul %336, %334, %cst_93 {dimension_numbers = #tpu.dot_dimension_numbers<[1], [1], [0], [0], [0, 0, 1, 0], [], []>} : vector<2x32xbf16>, vector<2x32xbf16>, vector<2x2xf32> -> vector<2x2xf32>
    %338 = vector.broadcast %335 : vector<1x2xf32> to vector<2x2xf32>
    %339 = arith.addf %337, %338 : vector<2x2xf32>
    %c0_94 = arith.constant 0 : index
    %c0_95 = arith.constant 0 : index
    %340 = vector.load %arg8[%c0_94, %c0_95] : memref<2x2xf32, #tpu.memory_space<vmem>>, vector<2x2xf32>
    tpu.vector_store %arg8[%c0_94, %c0_95], %339 {strides = array<i32>} : memref<2x2xf32, #tpu.memory_space<vmem>>, vector<2x2xf32>,
    %c0_96 = arith.constant 0 : index
    %c0_97 = arith.constant 0 : index
    %341 = vector.load %arg7[%c0_96, %c0_97] : memref<2x2xf32, #tpu.memory_space<vmem>>, vector<2x2xf32>
    %cst_98 = arith.constant 0.000000e+00 : f32
    %342 = vector.broadcast %cst_98 : f32 to vector<2x2xf32>
    %343 = arith.maximumf %339, %342 : vector<2x2xf32>
    %344 = arith.mulf %339, %341 : vector<2x2xf32>
    %345 = arith.subf %343, %344 : vector<2x2xf32>
    %346 = math.absf %339 : vector<2x2xf32>
    %cst_99 = arith.constant 0.000000e+00 : f32
    %347 = vector.broadcast %cst_99 : f32 to vector<2x2xf32>
    %348 = arith.subf %347, %346 : vector<2x2xf32>
    %349 = math.exp %348 : vector<2x2xf32>
    %cst_100 = arith.constant 1.000000e+00 : f32
    %350 = vector.broadcast %cst_100 : f32 to vector<2x2xf32>
    %351 = arith.addf %350, %349 : vector<2x2xf32>
    %352 = math.log %351 : vector<2x2xf32>
    %353 = arith.addf %345, %352 : vector<2x2xf32>
    %cst_101 = arith.constant dense<0.000000e+00> : vector<2xf32>
    %354 = vector.multi_reduction <add>, %353, %cst_101 [1] : vector<2x2xf32> to vector<2xf32>
    %355 = vector.shape_cast %354 : vector<2xf32> to vector<2x1xf32>
    %cst_102 = arith.constant 2.000000e+00 : f32
    %356 = vector.broadcast %cst_102 : f32 to vector<2x1xf32>
    %357 = arith.divf %355, %356 : vector<2x1xf32>
    %cst_103 = arith.constant dense<0.000000e+00> : vector<1xf32>
    %358 = vector.multi_reduction <add>, %357, %cst_103 [0] : vector<2x1xf32> to vector<1xf32>
    %359 = vector.shape_cast %358 : vector<1xf32> to vector<1x1xf32>
    %cst_104 = arith.constant 2.000000e+00 : f32
    %360 = vector.broadcast %cst_104 : f32 to vector<1x1xf32>
    %361 = arith.divf %359, %360 : vector<1x1xf32>
    %c0_105 = arith.constant 0 : index
    %c0_106 = arith.constant 0 : index
    %362 = vector.load %arg9[%c0_105, %c0_106] : memref<1x1xf32, #tpu.memory_space<vmem>>, vector<1x1xf32>
    tpu.vector_store %arg9[%c0_105, %c0_106], %361 {strides = array<i32>} : memref<1x1xf32, #tpu.memory_space<vmem>>, vector<1x1xf32>,
    return
  }
}

</mosaic_0001>

<bundles_post_ra>
// kernel: bert_multilabel_forward.1
= control target key start
LH: loop header
LB: loop body
LE: loop exit
PB: predicated region body
PF: predicated region fallthrough
CT: control target
= control target key end

     0   :  { %15 = vsyncpa [#allocation3], 0  ;;  %v2085_v1 = vmov 0   ;;  %v2086_v2 = vmov 0.0   ;;  %vm2087_vm0 = vmmov 0   ;;  %v2088_v6 = vmov 1   ;;  %s2579_s0 = inlined_call_operand.vmem [shape: f32[16,3], index: 0, kind: input, shape index: {}]   ;;  %s2580_s1 = inlined_call_operand.vmem [shape: f32[2,16], index: 1, kind: input, shape index: {}]   ;;  %s2581_s2 = inlined_call_operand.vmem [shape: bf16[130,32], index: 2, kind: input, shape index: {}]   ;;  %s2582_s3 = inlined_call_operand.vmem [shape: f32[21,32], index: 3, kind: input, shape index: {}]   ;;  %s2583_s4 = inlined_call_operand.vmem [shape: bf16[2,32,192], index: 4, kind: input, shape index: {}]   ;;  %s2584_s5 = inlined_call_operand.vmem [shape: bf16[2,64,32], index: 5, kind: input, shape index: {}]   ;;  %s2585_s6 = inlined_call_operand.vmem [shape: f32[2,8,96], index: 6, kind: input, shape index: {}]   ;;  %s2586_s7 = inlined_call_operand.vmem [shape: f32[2,2], index: 7, kind: input, shape index: {}]   ;;  %s2587_s8 = inlined_call_operand.hbm [shape: f32[2,2], index: 8, kind: output, shape index: {0}]   ;;  %s2588_s9 = inlined_call_operand.hbm [shape: f32[1,1], index: 9, kind: output, shape index: {1}]  }
   0x1   :  { %v2153_v0 = vld [vmem:[%s2579_s0] sm:$0xff]  ;;  %1932 = vset.pattern.permute.xlu0 %v2085_v1  ;;  %1765 = vmatprep.subr.bf16.mxu0 %v2086_v2  ;;  %v1947_v3 = vld [vmem:[%s2581_s2 + $0x38] sm:$0xff]   ;;  %v2163_v4 = vld [vmem:[%s2579_s0 + $0x8] sm:$0xff] }
   0x2   :  { %67 = vperm.xlu0 %1932, %v2153_v0   ;;  %1785 = vmatprep.subr.bf16.mxu1 %v2086_v2  ;;  %v1948_v5 = vld [vmem:[%s2581_s2 + $0x30] sm:$0xff]   ;;  %v1949_v7 = vld [vmem:[%s2581_s2 + $0x28] sm:$0xff]   ;;  %v1950_v8 = vld [vmem:[%s2581_s2 + $0x20] sm:$0xff]  }
   0x3   :  { %1766 = vmatpush3.bf16.msra.mxu0 %v1947_v3  ;;  %1781 = vmatprep.mubr.msk.bf16.mxu0 %vm2087_vm0, %v2086_v2  ;;  %v1951_v9 = vld [vmem:[%s2581_s2 + $0x18] sm:$0xff]  }
   0x4   :  { %1767 = vmatprep.subr.bf16.mxu0 %v2086_v2  ;;  %1789 = vmatprep.mubr.msk.bf16.mxu1 %vm2087_vm0, %v2086_v2 }
   0x5   :  { %1933 = vset.pattern.permute.xlu1 %v2088_v6 }
   0x6   :  { %71 = vperm.xlu0 %1932, %v2163_v4   ;;  %102 = vperm.xlu1 %1933, %v2153_v0  }
   0x7   :  { %1768 = vmatpush3.bf16.msra.mxu0 %v1948_v5 }
   0x8   :  { %1769 = vmatprep.subr.bf16.mxu0 %v2086_v2 }
   0xa   :  { %106 = vperm.xlu1 %1933, %v2163_v4  }
   0xb   :  { %1770 = vmatpush3.bf16.msra.mxu0 %v1949_v7 }
   0xc   :  { %1771 = vmatprep.subr.bf16.mxu0 %v2086_v2 }
   0xf   :  { %1772 = vmatpush3.bf16.msra.mxu0 %v1950_v8 }
  0x10   :  { %1773 = vmatprep.subr.bf16.mxu0 %v2086_v2 }
  0x11   :  { %16 = vsyncpa [#allocation5], 0  ;;  %v1952_v10 = vld [vmem:[%s2581_s2 + $0x10] sm:$0xff]   ;;  %v1953_v11 = vld [vmem:[%s2581_s2 + $0x8] sm:$0xff]   ;;  %v47_v13 = vlaneseq  ;;  %v2089_v18 = vmov 1.0|1.0  }
  0x12   :  { %v1954_v12 = vld [vmem:[%s2581_s2] sm:$0xff]   ;;  %v98_v20 = vld [vmem:[%s2582_s3 + $0x10] sm:$0x1]  ;;  %v99_v21 = vld [vmem:[%s2582_s3 + $0x11] sm:$0x1]  ;;  %vm214_vm4 = vcmask 261120  }
  0x13   :  { %1774 = vmatpush3.bf16.msra.mxu0 %v1951_v9  ;;  %v64_v14 = vand.u32 127, %v47_v13  ;;  %v2205_v19 = vshrl.u32 %v47_v13, 7  ;;  %v100_v23 = vsub.f32 %v99_v21, %v98_v20  ;;  %v97_v29 = vld [vmem:[%s2582_s3] sm:$0xff]  ;;  %v2228_v53 = vld [vmem:[%s2583_s4 + $0x10] ss:$8 sps:$4 sm:$0xff]   ;;  %s2091_s22 = smov 96  }
  0x14   :  { %1775 = vmatprep.subr.bf16.mxu0 %v2086_v2  ;;  %1786 = vmatpush3.bf16.msra.mxu1 %v2228_v53  ;;  %v2234_v54 = vld [vmem:[%s2583_s4] ss:$8 sps:$4 sm:$0xff]   ;;  %v1658_v63 = vld [vmem:[%s2582_s3 + $0x12] ss:$0 sm:$0xff]  ;;  %v1659_v7 = vld [vmem:[%s2582_s3 + $0x13] ss:$0 sm:$0xff] }
  0x15   :  { %v65_v16 = vcvt.s32.f32 %v64_v14  ;;  %v2214_v22 = vsub.s32 0, %v2205_v19  ;;  %1787 = vmatprep.subr.bf16.mxu1 %v2086_v2  ;;  %vm324_vm5 = vcmask 130048   ;;  %s2093_s25 = smov 64   ;;  %s2094_s26 = smov 112   ;;  %vm780_vm8 = vcmask 523264  }
  0x16   :  { %s2095_s27 = smov 48   ;;  %s2096_s11 = smov 32   ;;  %vm1527_vm10 = vcmask 123904   ;;  %vm1586_vm11 = vcmask 9216  }
  0x17   :  { %1776 = vmatpush3.bf16.msra.mxu0 %v1952_v10  ;;  %v112_v24 = vrot.slane %v100_v23, %v2214_v22  ;;  %v118_v26 = vrot.slane %v98_v20, %v2214_v22  ;;  %v2090_v20 = vmov 2   ;;  %s2097_s12 = smov 16  }
  0x18   :  { %1777 = vmatprep.subr.bf16.mxu0 %v2086_v2  ;;  %1788 = vmatpush3.bf16.msra.mxu1 %v2234_v54 }
  0x19   :  { %1793 = vmatprep.subr.bf16.mxu1 %v2086_v2  ;;  %1934 = vset.pattern.permute.xlu0 %v2090_v20 }
  0x1a   :  { %1935 = vset.pattern.permute.xlu1 %v2090_v20 }
  0x1b   :  { %1778 = vmatpush3.bf16.msra.mxu0 %v1953_v11 }
  0x1c   :  { %1779 = vmatprep.subr.bf16.mxu0 %v2086_v2 }
  0x1f   :  { %1780 = vmatpush3.bf16.msra.mxu0 %v1954_v12  ;;  %v2257_v12 = vld [vmem:[%s2585_s6] sm:$0xff] }
  0x20   :  { %1811 = vmatprep.subr.bf16.mxu0 %v2086_v2  ;;  %v263_v14 = vrot.slane %v2257_v12, %v2214_v22 }
  0x7d   :  { %v68_v15 = vpop.permute.xlu0 %67 }
  0x7e   :  { %vm74_vm1 = vcmp.eq.f32.partialorder %v65_v16, %v68_v15 }
  0x81   :  { %v72_v17 = vpop.permute.xlu0 %71  ;;  %v103_v25 = vpop.permute.xlu1 %102 }
  0x82   :  { %vm75_vm2 = vcmp.eq.f32.partialorder %v65_v16, %v72_v17  ;;  %v113_v27 = vmul.f32 %v112_v24, %v103_v25 }
  0x83   :  { %vm1656_vm3 = vmpackc.low %vm75_vm2, %vm74_vm1 }
  0x84   :  { %1782 = vmatmul.mubr.msk.bf16.vlgmr.msra.gmra.mxu0 %vm1656_vm3, %v2089_v18  ;;  %v119_v30 = vadd.f32 %v118_v26, %v113_v27 }
  0x85   :  { %1813 = vmatprep.mubr.msk.bf16.mxu0 %vm2087_vm0, %v2086_v2  ;;  %v107_v28 = vpop.permute.xlu1 %106 }
  0x86   :  { %v114_v32 = vmul.f32 %v112_v24, %v107_v28 }
  0x88   :  { %v120_v37 = vadd.f32 %v118_v26, %v114_v32 }
 0x144   :  { %v203_v31 = vpop.f32.mrf.mxu0 }
 0x145   :  { %v204_v33 = vadd.f32 %v203_v31, %v97_v29 }
 0x146   :  { %v1783_v34 = vpop.f32.mrf.mxu0 }
 0x147   :  { %v210_v35 = vadd.f32 %v204_v33, %v119_v30 }
 0x148   :  { %v206_v36 = vpop.f32.mrf.mxu0 }
 0x149   :  { %v207_v38 = vadd.f32 %v206_v36, %v97_v29  ;;  %v215_v39 = vsel %vm214_vm4, %v210_v35, 0.0 }
 0x14a   :  { %216 = vadd.xlane.f32.xlu0 %v215_v39  ;;  %v1784_v40 = vpop.f32.mrf.mxu0 }
 0x14b   :  { %v211_v41 = vadd.f32 %v207_v38, %v120_v37 }
 0x14d   :  { %v218_v42 = vsel %vm214_vm4, %v211_v41, 0.0 }
 0x14e   :  { %219 = vadd.xlane.f32.xlu1 %v218_v42 }
 0x1d3   :  { %v217_v43 = vpop.xlane.xlu0 %216 }
 0x1d4   :  { %v222_v44 = vmul.f32 0.03125, %v217_v43 }
 0x1d6   :  { %v224_v45 = vsub.f32 %v210_v35, %v222_v44 }
 0x1d7   :  { %v220_v46 = vpop.xlane.xlu1 %219 }
 0x1d8   :  { %v223_v47 = vmul.f32 0.03125, %v220_v46  ;;  %v226_v48 = vmul.f32 %v224_v45, %v224_v45 }
 0x1da   :  { %v225_v49 = vsub.f32 %v211_v41, %v223_v47  ;;  %v228_v50 = vsel %vm214_vm4, %v226_v48, 0.0 }
 0x1db   :  { %229 = vadd.xlane.f32.xlu0 %v228_v50 }
 0x1dc   :  { %v227_v51 = vmul.f32 %v225_v49, %v225_v49 }
 0x1de   :  { %v231_v52 = vsel %vm214_vm4, %v227_v51, 0.0 }
 0x1df   :  { %232 = vadd.xlane.f32.xlu0 %v231_v52 }
 0x1f5   :  { %39 = vperm.xlu0 %1934, %v2153_v0   ;;  %v2275_v0 = vsub.s32 1, %v2205_v19 }
 0x1f9   :  { %1946 = vset.pattern.permute.xlu0 %v2088_v6 }
 0x264   :  { %v230_v55 = vpop.xlane.xlu0 %229 }
 0x265   :  { %v234_v56 = vmul.f32 0.03125, %v230_v55 }
 0x267   :  { %v236_v57 = vadd.f32 1e-12, %v234_v56 }
 0x268   :  { %v233_v58 = vpop.xlane.xlu0 %232 }
 0x269   :  { %1975 = vrsqrt.f32 %v236_v57  ;;  %v235_v59 = vmul.f32 0.03125, %v233_v58 }
 0x26b   :  { %v237_v60 = vadd.f32 1e-12, %v235_v59 }
 0x26d   :  { %1977 = vrsqrt.f32 %v237_v60 }
 0x270   :  { %v40_v26 = vpop.permute.xlu0 %39 }
 0x276   :  { %v1976_v61 = vpop.eup %1975 }
 0x277   :  { %v240_v62 = vmul.f32 %v1976_v61, %v224_v45 }
 0x279   :  { %v246_v5 = vmul.f32 %v1658_v63, %v240_v62 }
 0x27a   :  { %v1978_v1 = vpop.eup %1977 }
 0x27b   :  { %v241_v3 = vmul.f32 %v1978_v1, %v225_v49  ;;  %v2245_v9 = vadd.f32 %v1659_v7, %v246_v5 }
 0x27d   :  { %v247_v8 = vmul.f32 %v1658_v63, %v241_v3 }
 0x27f   :  { %v2247_v10 = vadd.f32 %v1659_v7, %v247_v8 }
 0x281   :  { %v259_v11 = vpack.c.bf16 %v2247_v10, %v2245_v9 }
 0x283   :  { %1790 = vmatmul.mubr.msk.bf16.vlgmr.msra.gmra.mxu1 %vm214_vm4, %v259_v11 }
 0x284   :  { %1795 = vmatprep.mubr.msk.bf16.mxu1 %vm2087_vm0, %v2086_v2 }
 0x343   :  { %v313_v13 = vpop.f32.mrf.mxu1 }
 0x344   :  { %v314_v17 = vadd.f32 %v313_v13, %v263_v14 }
 0x345   :  { %v1791_v15 = vpop.f32.mrf.mxu1 }
 0x347   :  { %v316_v16 = vpop.f32.mrf.mxu1 }
 0x348   :  { %v317_v18 = vadd.f32 %v316_v16, %v263_v14 }
 0x349   :  { %v1792_v21 = vpop.f32.mrf.mxu1 }
 0x34a   :  { %v2262_v23 = vpack.c.bf16 %v317_v18, %v314_v17 }
 0x34c   :  { %322 = vrot.lane.b32.xlu1 %v2262_v23, %s2091_s22 }
 0x350   :  { %44 = vperm.xlu1 %1935, %v2163_v4   ;;  %v36_v4 = vld [vmem:[%s2580_s1] sm:$0x3]  ;;  %s2092_s1 = smov 80  }
 0x351   :  { %v2281_v6 = vrot.slane %v36_v4, %v2275_v0  ;;  %v2284_v27 = vrot.slane %v36_v4, %v2214_v22 }
 0x353   :  { %vm51_vm6 = vcmp.eq.f32.partialorder %v40_v26, %v2281_v6 }
 0x354   :  { %v57_v29 = vsel %vm51_vm6, %v2284_v27, 0.0 }
 0x355   :  { %v1644_v30 = vadd.f32 -1.0, %v57_v29 }
 0x357   :  { %v2290_v32 = vmul.f32 1e+09, %v1644_v30 }
 0x3be   :  { %v323_v24 = vpop.permute.xlu1 %322 }
 0x3bf   :  { %v329_v25 = vsel %vm324_vm5, %v323_v24, 0 }
 0x3c0   :  { %1794 = vmatpush3.bf16.xpose.msra.mxu1 %v329_v25 }
 0x3c1   :  { %1799 = vmatprep.subr.bf16.mxu1 %v2086_v2 }
 0x3c7   :  { %1796 = vmatmul.mubr.msk.bf16.vlgmr.msra.gmra.mxu1 %vm324_vm5, %v2262_v23 }
 0x3c8   :  { %1801 = vmatprep.mubr.msk.bf16.mxu1 %vm2087_vm0, %v2086_v2 }
 0x3cb   :  { %v45_v28 = vpop.permute.xlu1 %44 }
 0x3cc   :  { %vm52_vm7 = vcmp.eq.f32.partialorder %v45_v28, %v2281_v6 }
 0x3cd   :  { %v58_v31 = vsel %vm52_vm7, %v2284_v27, 0.0 }
 0x3ce   :  { %v1645_v33 = vadd.f32 -1.0, %v58_v31 }
 0x3d0   :  { %v2292_v35 = vmul.f32 1e+09, %v1645_v33 }
 0x487   :  { %v365_v34 = vpop.f32.mrf.mxu1 }
 0x488   :  { %v366_v36 = vadd.f32 %v365_v34, %v2290_v32 }
 0x489   :  { %v1797_v37 = vpop.f32.mrf.mxu1 }
 0x48a   :  { %v372_v38 = vsel %vm324_vm5, %v366_v36, -inf }
 0x48b   :  { %v368_v39 = vpop.f32.mrf.mxu1  ;;  %373 = vmax.xlane.f32.xlu1 %v372_v38 }
 0x48c   :  { %v369_v40 = vadd.f32 %v368_v39, %v2292_v35 }
 0x48d   :  { %v1798_v41 = vpop.f32.mrf.mxu1 }
 0x48e   :  { %v375_v42 = vsel %vm324_vm5, %v369_v40, -inf }
 0x48f   :  { %376 = vmax.xlane.f32.xlu0 %v375_v42 }
 0x4a5   :  { %444 = vrot.lane.b32.xlu0 %v2262_v23, %s2092_s1 }
 0x514   :  { %v374_v43 = vpop.xlane.xlu1 %373 }
 0x515   :  { %v378_v44 = vsub.f32 %v366_v36, %v374_v43  ;;  %v1957_v43 = vld [vmem:[%s2583_s4 + $0x14] ss:$8 sps:$4 sm:$0xff]  }
 0x517   :  { %v380_v45 = vmul.f32 1.442695, %v378_v44 }
 0x518   :  { %v377_v46 = vpop.xlane.xlu0 %376 }
 0x519   :  { %1979 = vpow2.f32 %v380_v45  ;;  %v379_v47 = vsub.f32 %v369_v40, %v377_v46 }
 0x51b   :  { %v382_v48 = vmul.f32 1.442695, %v379_v47 }
 0x51c   :  { %v445_v62 = vpop.permute.xlu0 %444 }
 0x51d   :  { %1981 = vpow2.f32 %v382_v48  ;;  %v450_v1 = vsel %vm324_vm5, %v445_v62, 0 }
 0x526   :  { %v1980_v49 = vpop.eup %1979 }
 0x527   :  { %v384_v50 = vsel %vm324_vm5, %v1980_v49, 0.0 }
 0x528   :  { %385 = vadd.xlane.f32.xlu1 %v384_v50 }
 0x52a   :  { %v1982_v51 = vpop.eup %1981 }
 0x52b   :  { %v387_v52 = vsel %vm324_vm5, %v1982_v51, 0.0 }
 0x52c   :  { %388 = vadd.xlane.f32.xlu1 %v387_v52 }
 0x53d   :  { %395 = vrot.lane.b32.xlu1 %v2262_v23, %s2093_s25 }
 0x541   :  { %442 = vrot.lane.b32.xlu1 %v2262_v23, %s2094_s26 }
 0x5b1   :  { %v386_v55 = vpop.xlane.xlu1 %385 }
 0x5b2   :  { %1983 = vrcp.f32 %v386_v55 }
 0x5b5   :  { %v389_v56 = vpop.xlane.xlu1 %388 }
 0x5b6   :  { %1985 = vrcp.f32 %v389_v56 }
 0x5b9   :  { %v396_v57 = vpop.permute.xlu1 %395 }
 0x5ba   :  { %1800 = vmatpush3.bf16.msra.mxu1 %v396_v57 }
 0x5bb   :  { %1805 = vmatprep.subr.bf16.mxu1 %v2086_v2 }
 0x5bd   :  { %v443_v3 = vpop.permute.xlu1 %442 }
 0x5bf   :  { %v1984_v58 = vpop.eup %1983 }
 0x5c0   :  { %v392_v60 = vmul.f32 %v1984_v58, %v1980_v49 }
 0x5c3   :  { %v1986_v59 = vpop.eup %1985 }
 0x5c4   :  { %v393_v61 = vmul.f32 %v1986_v59, %v1982_v51 }
 0x5c6   :  { %v394_v63 = vpack.c.bf16 %v393_v61, %v392_v60 }
 0x5c8   :  { %1802 = vmatmul.mubr.msk.bf16.vlgmr.msra.gmra.mxu1 %vm324_vm5, %v394_v63 }
 0x5c9   :  { %1806 = vmatpush3.bf16.xpose.msra.mxu1 %v450_v1  ;;  %1807 = vmatprep.mubr.msk.bf16.mxu1 %vm2087_vm0, %v2086_v2 }
 0x5ca   :  { %1817 = vmatprep.subr.bf16.mxu1 %v2086_v2 }
 0x5d0   :  { %1808 = vmatmul.mubr.msk.bf16.vlgmr.msra.gmra.mxu1 %vm324_vm5, %v443_v3 }
 0x5d1   :  { %1821 = vmatprep.mubr.msk.bf16.mxu1 %vm2087_vm0, %v2086_v2 }
 0x688   :  { %v2315_v5 = vpop.f32.mrf.mxu1 }
 0x68a   :  { %v1803_v7 = vpop.f32.mrf.mxu1 }
 0x68c   :  { %v2317_v8 = vpop.f32.mrf.mxu1 }
 0x68e   :  { %v1804_v11 = vpop.f32.mrf.mxu1 }
 0x690   :  { %v486_v13 = vpop.f32.mrf.mxu1 }
 0x691   :  { %v487_v14 = vadd.f32 %v486_v13, %v2290_v32 }
 0x692   :  { %v1809_v15 = vpop.f32.mrf.mxu1 }
 0x693   :  { %v493_v16 = vsel %vm324_vm5, %v487_v14, -inf }
 0x694   :  { %494 = vmax.xlane.f32.xlu1 %v493_v16  ;;  %v489_v17 = vpop.f32.mrf.mxu1 }
 0x695   :  { %v490_v18 = vadd.f32 %v489_v17, %v2292_v35 }
 0x696   :  { %v1810_v20 = vpop.f32.mrf.mxu1 }
 0x697   :  { %v496_v21 = vsel %vm324_vm5, %v490_v18, -inf }
 0x698   :  { %497 = vmax.xlane.f32.xlu0 %v496_v21 }
 0x6ae   :  { %580 = vrot.lane.b32.xlu0 %v2228_v53, %s2096_s11 }
 0x71d   :  { %v495_v24 = vpop.xlane.xlu1 %494 }
 0x71e   :  { %v499_v25 = vsub.f32 %v487_v14, %v495_v24 }
 0x720   :  { %v501_v4 = vmul.f32 1.442695, %v499_v25 }
 0x721   :  { %v498_v26 = vpop.xlane.xlu0 %497 }
 0x722   :  { %1987 = vpow2.f32 %v501_v4  ;;  %v500_v28 = vsub.f32 %v490_v18, %v498_v26 }
 0x724   :  { %v503_v29 = vmul.f32 1.442695, %v500_v28 }
 0x725   :  { %v581_v45 = vpop.permute.xlu0 %580 }
 0x726   :  { %1989 = vpow2.f32 %v503_v29  ;;  %1818 = vmatpush3.bf16.msra.mxu1 %v581_v45  ;;  %v658_v29 = vsub.s32 2, %v2205_v19  ;;  %v1963_v45 = vld [vmem:[%s2584_s5 + $0x8] sm:$0xff]  }
 0x727   :  { %1819 = vmatprep.subr.bf16.mxu1 %v2086_v2 }
 0x72f   :  { %v1988_v30 = vpop.eup %1987 }
 0x730   :  { %v505_v31 = vsel %vm324_vm5, %v1988_v30, 0.0 }
 0x731   :  { %506 = vadd.xlane.f32.xlu1 %v505_v31 }
 0x733   :  { %v1990_v33 = vpop.eup %1989 }
 0x734   :  { %v508_v34 = vsel %vm324_vm5, %v1990_v33, 0.0 }
 0x735   :  { %509 = vadd.xlane.f32.xlu1 %v508_v34  ;;  %v664_v34 = vsub.s32 3, %v2205_v19 }
 0x746   :  { %516 = vrot.lane.b32.xlu1 %v2262_v23, %s2095_s27  ;;  %v1960_v23 = vld [vmem:[%s2583_s4 + $0x4] ss:$8 sps:$4 sm:$0xff]  }
 0x7ba   :  { %v507_v36 = vpop.xlane.xlu1 %506 }
 0x7bb   :  { %1991 = vrcp.f32 %v507_v36 }
 0x7be   :  { %v510_v37 = vpop.xlane.xlu1 %509 }
 0x7bf   :  { %1993 = vrcp.f32 %v510_v37 }
 0x7c2   :  { %v517_v38 = vpop.permute.xlu1 %516 }
 0x7c3   :  { %1812 = vmatpush3.bf16.msra.mxu0 %v517_v38 }
 0x7c4   :  { %1825 = vmatprep.subr.bf16.mxu0 %v2086_v2 }
 0x7c8   :  { %v1992_v39 = vpop.eup %1991 }
 0x7c9   :  { %v513_v41 = vmul.f32 %v1992_v39, %v1988_v30  ;;  %v665_v39 = vrot.slane %v2257_v12, %v664_v34 }
 0x7cc   :  { %v1994_v40 = vpop.eup %1993 }
 0x7cd   :  { %v514_v42 = vmul.f32 %v1994_v40, %v1990_v33  ;;  %v659_v33 = vrot.slane %v2257_v12, %v658_v29 }
 0x7cf   :  { %v515_v44 = vpack.c.bf16 %v514_v42, %v513_v41 }
 0x7d1   :  { %1814 = vmatmul.mubr.msk.bf16.vlgmr.msra.gmra.mxu0 %vm324_vm5, %v515_v44  ;;  %v1961_v44 = vld [vmem:[%s2584_s5 + $0x18] sm:$0xff]  }
 0x7d2   :  { %1826 = vmatpush3.bf16.msra.mxu0 %v1957_v43  ;;  %1829 = vmatprep.mubr.msk.bf16.mxu0 %vm2087_vm0, %v2086_v2 }
 0x7d3   :  { %1827 = vmatprep.subr.bf16.mxu0 %v2086_v2 }
 0x7d6   :  { %1828 = vmatpush3.bf16.msra.mxu0 %v1960_v23  ;;  %v1962_v23 = vld [vmem:[%s2584_s5 + $0x10] sm:$0xff]  }
 0x7d7   :  { %1845 = vmatprep.subr.bf16.mxu0 %v2086_v2 }
 0x891   :  { %v556_v46 = vpop.f32.mrf.mxu0 }
 0x893   :  { %v1815_v47 = vpop.f32.mrf.mxu0 }
 0x894   :  { %v671_v47 = vsub.s32 4, %v2205_v19 }
 0x895   :  { %v559_v48 = vpop.f32.mrf.mxu0 }
 0x896   :  { %v1936_v49 = vpack.i.bf16 %v559_v48, %v556_v46  ;;  %v1964_v46 = vld [vmem:[%s2584_s5] sm:$0xff]   ;;  %v672_v48 = vrot.slane %v2257_v12, %v671_v47 }
 0x897   :  { %v1816_v50 = vpop.f32.mrf.mxu0 }
 0x898   :  { %1937 = vrot.lane.b32.xlu1 %v1936_v49, %s2097_s12 }
 0x89c   :  { %578 = vrot.lane.b32.xlu1 %v2234_v54, %s2096_s11  ;;  %v577_v54 = vrot.slane %v2257_v12, %v2275_v0 }
 0x90a   :  { %v1938_v51 = vpop.permute.xlu1 %1937 }
 0x90b   :  { %v1940_v52 = vunpack.i.h.bf16 %v1938_v51  ;;  %v1939_v55 = vunpack.i.l.bf16 %v1938_v51 }
 0x90d   :  { %v572_v53 = vsel %vm324_vm5, %v2317_v8, %v1940_v52  ;;  %v571_v56 = vsel %vm324_vm5, %v2315_v5, %v1939_v55 }
 0x90e   :  { %v579_v57 = vpop.permute.xlu1 %578  ;;  %v573_v58 = vpack.c.bf16 %v572_v53, %v571_v56 }
 0x90f   :  { %1820 = vmatpush3.bf16.msra.mxu1 %v579_v57 }
 0x910   :  { %1833 = vmatprep.subr.bf16.mxu1 %v2086_v2 }
 0x912   :  { %1822 = vmatmul.mubr.msk.bf16.vlgmr.msra.gmra.mxu1 %vm214_vm4, %v573_v58 }
 0x913   :  { %1841 = vmatprep.mubr.msk.bf16.mxu1 %vm2087_vm0, %v2086_v2  ;;  %1834 = vmatpush3.bf16.msra.mxu1 %v1961_v44 }
 0x914   :  { %1835 = vmatprep.subr.bf16.mxu1 %v2086_v2 }
 0x917   :  { %1836 = vmatpush3.bf16.msra.mxu1 %v1962_v23  ;;  %v2412_v23 = vld [vmem:[%s2583_s4 + $0x20] ss:$8 sps:$4 sm:$0xff]  }
 0x918   :  { %1837 = vmatprep.subr.bf16.mxu1 %v2086_v2 }
 0x91b   :  { %1838 = vmatpush3.bf16.msra.mxu1 %v1963_v45 }
 0x91c   :  { %1839 = vmatprep.subr.bf16.mxu1 %v2086_v2 }
 0x91f   :  { %1840 = vmatpush3.bf16.msra.mxu1 %v1964_v46 }
 0x920   :  { %1859 = vmatprep.subr.bf16.mxu1 %v2086_v2 }
 0x9d2   :  { %v621_v59 = vpop.f32.mrf.mxu1 }
 0x9d3   :  { %v622_v60 = vadd.f32 %v621_v59, %v577_v54 }
 0x9d4   :  { %v1823_v61 = vpop.f32.mrf.mxu1 }
 0x9d5   :  { %v628_v62 = vadd.f32 %v622_v60, %v2245_v9 }
 0x9d6   :  { %v624_v63 = vpop.f32.mrf.mxu1 }
 0x9d7   :  { %v625_v1 = vadd.f32 %v624_v63, %v577_v54  ;;  %v630_v3 = vsel %vm214_vm4, %v628_v62, 0.0 }
 0x9d8   :  { %631 = vadd.xlane.f32.xlu0 %v630_v3  ;;  %v1824_v5 = vpop.f32.mrf.mxu1 }
 0x9d9   :  { %v629_v7 = vadd.f32 %v625_v1, %v2247_v10 }
 0x9db   :  { %v633_v8 = vsel %vm214_vm4, %v629_v7, 0.0 }
 0x9dc   :  { %634 = vadd.xlane.f32.xlu1 %v633_v8 }
 0xa61   :  { %v632_v11 = vpop.xlane.xlu0 %631 }
 0xa62   :  { %v636_v13 = vmul.f32 0.03125, %v632_v11 }
 0xa64   :  { %v638_v14 = vsub.f32 %v628_v62, %v636_v13 }
 0xa65   :  { %v635_v15 = vpop.xlane.xlu1 %634 }
 0xa66   :  { %v637_v16 = vmul.f32 0.03125, %v635_v15  ;;  %v640_v17 = vmul.f32 %v638_v14, %v638_v14 }
 0xa68   :  { %v639_v18 = vsub.f32 %v629_v7, %v637_v16  ;;  %v642_v9 = vsel %vm214_vm4, %v640_v17, 0.0  ;;  %v754_v17 = vsub.s32 5, %v2205_v19 }
 0xa69   :  { %643 = vadd.xlane.f32.xlu0 %v642_v9 }
 0xa6a   :  { %v641_v20 = vmul.f32 %v639_v18, %v639_v18 }
 0xa6c   :  { %v645_v21 = vsel %vm214_vm4, %v641_v20, 0.0 }
 0xa6d   :  { %646 = vadd.xlane.f32.xlu0 %v645_v21 }
 0xaf2   :  { %v644_v24 = vpop.xlane.xlu0 %643 }
 0xaf3   :  { %v648_v25 = vmul.f32 0.03125, %v644_v24 }
 0xaf5   :  { %v650_v10 = vadd.f32 1e-12, %v648_v25 }
 0xaf6   :  { %v647_v4 = vpop.xlane.xlu0 %646 }
 0xaf7   :  { %1995 = vrsqrt.f32 %v650_v10  ;;  %v649_v26 = vmul.f32 0.03125, %v647_v4 }
 0xaf9   :  { %v651_v28 = vadd.f32 1e-12, %v649_v26 }
 0xafb   :  { %1997 = vrsqrt.f32 %v651_v28 }
 0xb04   :  { %v1996_v30 = vpop.eup %1995 }
 0xb05   :  { %v654_v31 = vmul.f32 %v1996_v30, %v638_v14 }
 0xb07   :  { %v660_v38 = vmul.f32 %v659_v33, %v654_v31 }
 0xb08   :  { %v1998_v36 = vpop.eup %1997 }
 0xb09   :  { %v655_v37 = vmul.f32 %v1998_v36, %v639_v18  ;;  %v666_v41 = vadd.f32 %v665_v39, %v660_v38  ;;  %v755_v18 = vrot.slane %v2257_v12, %v754_v17 }
 0xb0b   :  { %v661_v40 = vmul.f32 %v659_v33, %v655_v37 }
 0xb0d   :  { %v667_v42 = vadd.f32 %v665_v39, %v661_v40 }
 0xb0f   :  { %v668_v43 = vpack.c.bf16 %v667_v42, %v666_v41 }
 0xb11   :  { %1830 = vmatmul.mubr.msk.bf16.vlgmr.msra.gmra.mxu0 %vm214_vm4, %v668_v43 }
 0xb12   :  { %1849 = vmatprep.mubr.msk.bf16.mxu0 %vm2087_vm0, %v2086_v2 }
 0xbd1   :  { %v718_v49 = vpop.f32.mrf.mxu0 }
 0xbd2   :  { %v719_v50 = vadd.f32 %v718_v49, %v672_v48 }
 0xbd3   :  { %v1831_v51 = vpop.f32.mrf.mxu0 }
 0xbd4   :  { %v725_v52 = vmul.f32 %v719_v50, %v719_v50 }
 0xbd5   :  { %v721_v55 = vpop.f32.mrf.mxu0 }
 0xbd6   :  { %v727_v53 = vmul.f32 %v725_v52, %v719_v50  ;;  %v722_v56 = vadd.f32 %v721_v55, %v672_v48  ;;  %v855_v52 = vsub.s32 6, %v2205_v19 }
 0xbd7   :  { %v1832_v57 = vpop.f32.mrf.mxu0 }
 0xbd8   :  { %v729_v58 = vmul.f32 0.044715, %v727_v53  ;;  %v726_v54 = vmul.f32 %v722_v56, %v722_v56  ;;  %v861_v57 = vsub.s32 7, %v2205_v19 }
 0xbda   :  { %v731_v59 = vadd.f32 %v729_v58, %v719_v50  ;;  %v728_v60 = vmul.f32 %v726_v54, %v722_v56 }
 0xbdc   :  { %v733_v61 = vmul.f32 0.7978846, %v731_v59  ;;  %v730_v62 = vmul.f32 0.044715, %v728_v60  ;;  %v862_v60 = vrot.slane %v2257_v12, %v861_v57 }
 0xbde   :  { %1999 = vtanh.f32 %v733_v61  ;;  %v732_v63 = vadd.f32 %v730_v62, %v722_v56 }
 0xbe0   :  { %v734_v1 = vmul.f32 0.7978846, %v732_v63 }
 0xbe2   :  { %2001 = vtanh.f32 %v734_v1 }
 0xbeb   :  { %v2000_v3 = vpop.eup %1999 }
 0xbec   :  { %v737_v5 = vadd.f32 1.0, %v2000_v3  ;;  %v2437_v3 = vld [vmem:[%s2585_s6 + $0x8] sm:$0xff] }
 0xbee   :  { %v739_v8 = vmul.f32 0.5, %v737_v5 }
 0xbef   :  { %v2002_v7 = vpop.eup %2001 }
 0xbf0   :  { %v738_v11 = vadd.f32 1.0, %v2002_v7  ;;  %v741_v14 = vmul.f32 %v739_v8, %v719_v50 }
 0xbf2   :  { %v740_v13 = vmul.f32 0.5, %v738_v11 }
 0xbf4   :  { %v742_v15 = vmul.f32 %v740_v13, %v722_v56  ;;  %v856_v56 = vrot.slane %v2257_v12, %v855_v52  ;;  %v876_v12 = vrot.slane %v2437_v3, %v2214_v22 }
 0xbf6   :  { %v743_v16 = vpack.c.bf16 %v742_v15, %v741_v14 }
 0xbf8   :  { %1842 = vmatmul.mubr.msk.bf16.vlgmr.msra.gmra.mxu1 %vm780_vm8, %v743_v16 }
 0xbf9   :  { %1861 = vmatprep.mubr.msk.bf16.mxu1 %vm2087_vm0, %v2086_v2 }
 0xcb8   :  { %v818_v9 = vpop.f32.mrf.mxu1 }
 0xcb9   :  { %v819_v20 = vadd.f32 %v818_v9, %v755_v18 }
 0xcba   :  { %v1843_v21 = vpop.f32.mrf.mxu1 }
 0xcbb   :  { %v825_v24 = vadd.f32 %v819_v20, %v666_v41 }
 0xcbc   :  { %v821_v25 = vpop.f32.mrf.mxu1 }
 0xcbd   :  { %v822_v10 = vadd.f32 %v821_v25, %v755_v18  ;;  %v827_v4 = vsel %vm214_vm4, %v825_v24, 0.0 }
 0xcbe   :  { %828 = vadd.xlane.f32.xlu1 %v827_v4  ;;  %v1844_v26 = vpop.f32.mrf.mxu1 }
 0xcbf   :  { %v826_v28 = vadd.f32 %v822_v10, %v667_v42  ;;  %v2406_v42 = vld [vmem:[%s2583_s4 + $0x30] ss:$8 sps:$4 sm:$0xff]  }
 0xcc0   :  { %1846 = vmatpush3.bf16.msra.mxu0 %v2406_v42 }
 0xcc1   :  { %v830_v30 = vsel %vm214_vm4, %v826_v28, 0.0  ;;  %1847 = vmatprep.subr.bf16.mxu0 %v2086_v2 }
 0xcc2   :  { %831 = vadd.xlane.f32.xlu0 %v830_v30 }
 0xcc4   :  { %1848 = vmatpush3.bf16.msra.mxu0 %v2412_v23 }
 0xcc5   :  { %1853 = vmatprep.subr.bf16.mxu0 %v2086_v2 }
 0xd47   :  { %v829_v31 = vpop.xlane.xlu1 %828 }
 0xd48   :  { %v833_v33 = vmul.f32 0.03125, %v829_v31 }
 0xd4a   :  { %v835_v36 = vsub.f32 %v825_v24, %v833_v33 }
 0xd4b   :  { %v832_v37 = vpop.xlane.xlu0 %831 }
 0xd4c   :  { %v834_v38 = vmul.f32 0.03125, %v832_v37  ;;  %v837_v39 = vmul.f32 %v835_v36, %v835_v36 }
 0xd4e   :  { %v836_v40 = vsub.f32 %v826_v28, %v834_v38  ;;  %v839_v43 = vsel %vm214_vm4, %v837_v39, 0.0 }
 0xd4f   :  { %840 = vadd.xlane.f32.xlu1 %v839_v43 }
 0xd50   :  { %v838_v41 = vmul.f32 %v836_v40, %v836_v40 }
 0xd52   :  { %v842_v44 = vsel %vm214_vm4, %v838_v41, 0.0 }
 0xd53   :  { %843 = vadd.xlane.f32.xlu0 %v842_v44 }
 0xdd8   :  { %v841_v45 = vpop.xlane.xlu1 %840 }
 0xdd9   :  { %v845_v46 = vmul.f32 0.03125, %v841_v45 }
 0xddb   :  { %v847_v48 = vadd.f32 1e-12, %v845_v46 }
 0xddc   :  { %v844_v49 = vpop.xlane.xlu0 %843 }
 0xddd   :  { %2003 = vrsqrt.f32 %v847_v48  ;;  %v846_v50 = vmul.f32 0.03125, %v844_v49 }
 0xddf   :  { %v848_v51 = vadd.f32 1e-12, %v846_v50 }
 0xde1   :  { %2005 = vrsqrt.f32 %v848_v51 }
 0xdea   :  { %v2004_v55 = vpop.eup %2003 }
 0xdeb   :  { %v851_v53 = vmul.f32 %v2004_v55, %v835_v36 }
 0xded   :  { %v857_v59 = vmul.f32 %v856_v56, %v851_v53 }
 0xdee   :  { %v2006_v58 = vpop.eup %2005 }
 0xdef   :  { %v852_v54 = vmul.f32 %v2006_v58, %v836_v40  ;;  %v2425_v62 = vadd.f32 %v862_v60, %v857_v59 }
 0xdf1   :  { %v858_v61 = vmul.f32 %v856_v56, %v852_v54 }
 0xdf3   :  { %v2427_v63 = vadd.f32 %v862_v60, %v858_v61 }
 0xdf5   :  { %v872_v1 = vpack.c.bf16 %v2427_v63, %v2425_v62 }
 0xdf7   :  { %1850 = vmatmul.mubr.msk.bf16.vlgmr.msra.gmra.mxu0 %vm214_vm4, %v872_v1 }
 0xdf8   :  { %1855 = vmatprep.mubr.msk.bf16.mxu0 %vm2087_vm0, %v2086_v2 }
 0xeb7   :  { %v926_v5 = vpop.f32.mrf.mxu0 }
 0xeb8   :  { %v927_v11 = vadd.f32 %v926_v5, %v876_v12 }
 0xeb9   :  { %v1851_v7 = vpop.f32.mrf.mxu0 }
 0xebb   :  { %v929_v8 = vpop.f32.mrf.mxu0 }
 0xebc   :  { %v930_v13 = vadd.f32 %v929_v8, %v876_v12 }
 0xebd   :  { %v1852_v14 = vpop.f32.mrf.mxu0 }
 0xebe   :  { %v2441_v15 = vpack.c.bf16 %v930_v13, %v927_v11 }
 0xec0   :  { %1056 = vrot.lane.b32.xlu0 %v2441_v15, %s2092_s1  ;;  %935 = vrot.lane.b32.xlu1 %v2441_v15, %s2091_s22 }
 0xec4   :  { %1054 = vrot.lane.b32.xlu1 %v2441_v15, %s2094_s26 }
 0xf32   :  { %v936_v16 = vpop.permute.xlu1 %935  ;;  %v1057_v22 = vpop.permute.xlu0 %1056 }
 0xf33   :  { %v941_v18 = vsel %vm324_vm5, %v936_v16, 0  ;;  %v1062_v9 = vsel %vm324_vm5, %v1057_v22, 0 }
 0xf34   :  { %1854 = vmatpush3.bf16.xpose.msra.mxu0 %v941_v18 }
 0xf35   :  { %1865 = vmatprep.subr.bf16.mxu0 %v2086_v2 }
 0xf36   :  { %v1055_v20 = vpop.permute.xlu1 %1054 }
 0xf3b   :  { %1856 = vmatmul.mubr.msk.bf16.vlgmr.msra.gmra.mxu0 %vm324_vm5, %v2441_v15 }
 0xf3c   :  { %1866 = vmatpush3.bf16.xpose.msra.mxu0 %v1062_v9  ;;  %1867 = vmatprep.mubr.msk.bf16.mxu0 %vm2087_vm0, %v2086_v2 }
 0xf3d   :  { %1877 = vmatprep.subr.bf16.mxu0 %v2086_v2 }
 0xf43   :  { %1868 = vmatmul.mubr.msk.bf16.vlgmr.msra.gmra.mxu0 %vm324_vm5, %v1055_v20 }
 0xf44   :  { %1881 = vmatprep.mubr.msk.bf16.mxu0 %vm2087_vm0, %v2086_v2 }
 0xffb   :  { %v977_v21 = vpop.f32.mrf.mxu0 }
 0xffc   :  { %v978_v24 = vadd.f32 %v977_v21, %v2290_v32 }
 0xffd   :  { %v1857_v25 = vpop.f32.mrf.mxu0 }
 0xffe   :  { %v984_v10 = vsel %vm324_vm5, %v978_v24, -inf }
 0xfff   :  { %985 = vmax.xlane.f32.xlu1 %v984_v10  ;;  %v980_v4 = vpop.f32.mrf.mxu0 }
0x1000   :  { %v981_v26 = vadd.f32 %v980_v4, %v2292_v35 }
0x1001   :  { %v1858_v28 = vpop.f32.mrf.mxu0 }
0x1002   :  { %v987_v30 = vsel %vm324_vm5, %v981_v26, -inf }
0x1003   :  { %988 = vmax.xlane.f32.xlu0 %v987_v30  ;;  %v1098_v31 = vpop.f32.mrf.mxu0 }
0x1004   :  { %v1099_v33 = vadd.f32 %v1098_v31, %v2290_v32 }
0x1005   :  { %v1869_v36 = vpop.f32.mrf.mxu0 }
0x1006   :  { %v1105_v37 = vsel %vm324_vm5, %v1099_v33, -inf }
0x1007   :  { %1106 = vmax.xlane.f32.xlu0 %v1105_v37  ;;  %v1101_v38 = vpop.f32.mrf.mxu0 }
0x1008   :  { %v1102_v39 = vadd.f32 %v1101_v38, %v2292_v35 }
0x1009   :  { %v1870_v40 = vpop.f32.mrf.mxu0 }
0x100a   :  { %v1108_v43 = vsel %vm324_vm5, %v1102_v39, -inf }
0x100b   :  { %1109 = vmax.xlane.f32.xlu1 %v1108_v43 }
0x1088   :  { %v986_v41 = vpop.xlane.xlu1 %985 }
0x1089   :  { %v990_v44 = vsub.f32 %v978_v24, %v986_v41 }
0x108b   :  { %v992_v45 = vmul.f32 1.442695, %v990_v44 }
0x108c   :  { %v989_v46 = vpop.xlane.xlu0 %988 }
0x108d   :  { %2007 = vpow2.f32 %v992_v45  ;;  %v991_v48 = vsub.f32 %v981_v26, %v989_v46  ;;  %v1189_v46 = vrot.slane %v2437_v3, %v2275_v0 }
0x108f   :  { %v994_v49 = vmul.f32 1.442695, %v991_v48 }
0x1090   :  { %v1107_v50 = vpop.xlane.xlu0 %1106 }
0x1091   :  { %2009 = vpow2.f32 %v994_v49  ;;  %v1111_v32 = vsub.f32 %v1099_v33, %v1107_v50 }
0x1093   :  { %v1113_v51 = vmul.f32 1.442695, %v1111_v32 }
0x1094   :  { %v1110_v55 = vpop.xlane.xlu1 %1109 }
0x1095   :  { %2011 = vpow2.f32 %v1113_v51  ;;  %v1112_v53 = vsub.f32 %v1102_v39, %v1110_v55 }
0x1097   :  { %v1115_v56 = vmul.f32 1.442695, %v1112_v53 }
0x1099   :  { %2013 = vpow2.f32 %v1115_v56 }
0x109a   :  { %v2008_v35 = vpop.eup %2007 }
0x109b   :  { %v996_v58 = vsel %vm324_vm5, %v2008_v35, 0.0 }
0x109c   :  { %997 = vadd.xlane.f32.xlu0 %v996_v58 }
0x109e   :  { %v2010_v54 = vpop.eup %2009 }
0x109f   :  { %v999_v59 = vsel %vm324_vm5, %v2010_v54, 0.0 }
0x10a0   :  { %1000 = vadd.xlane.f32.xlu1 %v999_v59 }
0x10a2   :  { %v2012_v60 = vpop.eup %2011 }
0x10a3   :  { %v1117_v61 = vsel %vm324_vm5, %v2012_v60, 0.0 }
0x10a4   :  { %1118 = vadd.xlane.f32.xlu0 %v1117_v61 }
0x10a6   :  { %v2014_v1 = vpop.eup %2013 }
0x10a7   :  { %v1120_v5 = vsel %vm324_vm5, %v2014_v1, 0.0 }
0x10a8   :  { %1121 = vadd.xlane.f32.xlu1 %v1120_v5 }
0x10b9   :  { %1128 = vrot.lane.b32.xlu1 %v2441_v15, %s2095_s27 }
0x10ba   :  { %1007 = vrot.lane.b32.xlu0 %v2441_v15, %s2093_s25 }
0x10bd   :  { %1192 = vrot.lane.b32.xlu1 %v2406_v42, %s2096_s11 }
0x10c1   :  { %1190 = vrot.lane.b32.xlu1 %v2412_v23, %s2096_s11 }
0x1125   :  { %v998_v12 = vpop.xlane.xlu0 %997 }
0x1126   :  { %2015 = vrcp.f32 %v998_v12 }
0x1129   :  { %v1001_v7 = vpop.xlane.xlu1 %1000 }
0x112a   :  { %2017 = vrcp.f32 %v1001_v7 }
0x112d   :  { %v1119_v8 = vpop.xlane.xlu0 %1118 }
0x112e   :  { %2019 = vrcp.f32 %v1119_v8  ;;  %v1970_v8 = vld [vmem:[%s2583_s4 + $0x24] ss:$8 sps:$4 sm:$0xff]  }
0x1131   :  { %v1008_v11 = vpop.permute.xlu0 %1007  ;;  %v1122_v13 = vpop.xlane.xlu1 %1121 }
0x1132   :  { %2021 = vrcp.f32 %v1122_v13  ;;  %1860 = vmatpush3.bf16.msra.mxu1 %v1008_v11 }
0x1133   :  { %1871 = vmatprep.subr.bf16.mxu1 %v2086_v2  ;;  %v2016_v14 = vpop.eup %2015 }
0x1134   :  { %v1004_v16 = vmul.f32 %v2016_v14, %v2008_v35 }
0x1135   :  { %v1129_v22 = vpop.permute.xlu1 %1128 }
0x1137   :  { %v2018_v15 = vpop.eup %2017 }
0x1138   :  { %v1005_v18 = vmul.f32 %v2018_v15, %v2010_v54 }
0x1139   :  { %v1193_v25 = vpop.permute.xlu1 %1192 }
0x113a   :  { %v1006_v42 = vpack.c.bf16 %v1005_v18, %v1004_v16  ;;  %1878 = vmatpush3.bf16.msra.mxu0 %v1193_v25 }
0x113b   :  { %v2020_v23 = vpop.eup %2019  ;;  %1879 = vmatprep.subr.bf16.mxu0 %v2086_v2 }
0x113c   :  { %1862 = vmatmul.mubr.msk.bf16.vlgmr.msra.gmra.mxu1 %vm324_vm5, %v1006_v42  ;;  %v1125_v20 = vmul.f32 %v2020_v23, %v2012_v60  ;;  %v1271_v23 = vrot.slane %v2437_v3, %v658_v29  ;;  %v1971_v29 = vld [vmem:[%s2584_s5 + $0x38] sm:$0xff]  }
0x113d   :  { %1872 = vmatpush3.bf16.msra.mxu1 %v1129_v22  ;;  %1873 = vmatprep.mubr.msk.bf16.mxu1 %vm2087_vm0, %v2086_v2  ;;  %v1191_v28 = vpop.permute.xlu1 %1190 }
0x113e   :  { %1885 = vmatprep.subr.bf16.mxu1 %v2086_v2  ;;  %1880 = vmatpush3.bf16.msra.mxu0 %v1191_v28  ;;  %v1973_v28 = vld [vmem:[%s2584_s5 + $0x28] sm:$0xff]  }
0x113f   :  { %v2022_v9 = vpop.eup %2021  ;;  %1893 = vmatprep.subr.bf16.mxu0 %v2086_v2 }
0x1140   :  { %v1126_v21 = vmul.f32 %v2022_v9, %v2014_v1 }
0x1142   :  { %v1127_v24 = vpack.c.bf16 %v1126_v21, %v1125_v20 }
0x1144   :  { %1874 = vmatmul.mubr.msk.bf16.vlgmr.msra.gmra.mxu1 %vm324_vm5, %v1127_v24  ;;  %v1277_v24 = vrot.slane %v2437_v3, %v664_v34  ;;  %v1972_v34 = vld [vmem:[%s2584_s5 + $0x30] sm:$0xff]  }
0x1145   :  { %1889 = vmatprep.mubr.msk.bf16.mxu1 %vm2087_vm0, %v2086_v2 }
0x11fc   :  { %v1047_v10 = vpop.f32.mrf.mxu1 }
0x11fe   :  { %v1863_v4 = vpop.f32.mrf.mxu1 }
0x1200   :  { %v1050_v26 = vpop.f32.mrf.mxu1 }
0x1202   :  { %v1864_v30 = vpop.f32.mrf.mxu1 }
0x1203   :  { %v1974_v30 = vld [vmem:[%s2584_s5 + $0x20] sm:$0xff]  }
0x1204   :  { %v1168_v31 = vpop.f32.mrf.mxu1 }
0x1206   :  { %v1875_v33 = vpop.f32.mrf.mxu1 }
0x1208   :  { %v1171_v36 = vpop.f32.mrf.mxu1 }
0x1209   :  { %v1941_v37 = vpack.i.bf16 %v1171_v36, %v1168_v31  ;;  %v1284_v31 = vrot.slane %v2437_v3, %v671_v47 }
0x120a   :  { %v1876_v38 = vpop.f32.mrf.mxu1 }
0x120b   :  { %1942 = vrot.lane.b32.xlu0 %v1941_v37, %s2097_s12 }
0x127d   :  { %v1943_v39 = vpop.permute.xlu0 %1942 }
0x127e   :  { %v1945_v40 = vunpack.i.h.bf16 %v1943_v39  ;;  %v1944_v43 = vunpack.i.l.bf16 %v1943_v39 }
0x1280   :  { %v1184_v41 = vsel %vm324_vm5, %v1050_v26, %v1945_v40  ;;  %v1183_v44 = vsel %vm324_vm5, %v1047_v10, %v1944_v43 }
0x1281   :  { %v1185_v45 = vpack.c.bf16 %v1184_v41, %v1183_v44 }
0x1283   :  { %1882 = vmatmul.mubr.msk.bf16.vlgmr.msra.gmra.mxu0 %vm214_vm4, %v1185_v45 }
0x1284   :  { %1901 = vmatprep.mubr.msk.bf16.mxu0 %vm2087_vm0, %v2086_v2  ;;  %1894 = vmatpush3.bf16.msra.mxu0 %v1971_v29 }
0x1285   :  { %1895 = vmatprep.subr.bf16.mxu0 %v2086_v2 }
0x1288   :  { %1896 = vmatpush3.bf16.msra.mxu0 %v1972_v34 }
0x1289   :  { %1897 = vmatprep.subr.bf16.mxu0 %v2086_v2 }
0x128c   :  { %1898 = vmatpush3.bf16.msra.mxu0 %v1973_v28 }
0x128d   :  { %1899 = vmatprep.subr.bf16.mxu0 %v2086_v2 }
0x1290   :  { %1900 = vmatpush3.bf16.msra.mxu0 %v1974_v30 }
0x1343   :  { %v1233_v48 = vpop.f32.mrf.mxu0 }
0x1344   :  { %v1234_v49 = vadd.f32 %v1233_v48, %v1189_v46 }
0x1345   :  { %v1883_v50 = vpop.f32.mrf.mxu0 }
0x1346   :  { %v1240_v32 = vadd.f32 %v1234_v49, %v2425_v62 }
0x1347   :  { %v1236_v51 = vpop.f32.mrf.mxu0 }
0x1348   :  { %v1237_v55 = vadd.f32 %v1236_v51, %v1189_v46  ;;  %v1242_v53 = vsel %vm214_vm4, %v1240_v32, 0.0 }
0x1349   :  { %1243 = vadd.xlane.f32.xlu0 %v1242_v53  ;;  %v1884_v56 = vpop.f32.mrf.mxu0 }
0x134a   :  { %v1241_v35 = vadd.f32 %v1237_v55, %v2427_v63  ;;  %v1969_v63 = vld [vmem:[%s2583_s4 + $0x34] ss:$8 sps:$4 sm:$0xff]  }
0x134b   :  { %1886 = vmatpush3.bf16.msra.mxu1 %v1969_v63 }
0x134c   :  { %v1245_v58 = vsel %vm214_vm4, %v1241_v35, 0.0  ;;  %1887 = vmatprep.subr.bf16.mxu1 %v2086_v2 }
0x134d   :  { %1246 = vadd.xlane.f32.xlu1 %v1245_v58 }
0x134f   :  { %1888 = vmatpush3.bf16.msra.mxu1 %v1970_v8 }
0x1350   :  { %1905 = vmatprep.subr.bf16.mxu1 %v2086_v2 }
0x13d2   :  { %v1244_v54 = vpop.xlane.xlu0 %1243 }
0x13d3   :  { %v1248_v59 = vmul.f32 0.03125, %v1244_v54 }
0x13d5   :  { %v1250_v60 = vsub.f32 %v1240_v32, %v1248_v59 }
0x13d6   :  { %v1247_v0 = vpop.xlane.xlu1 %1246 }
0x13d7   :  { %v1249_v61 = vmul.f32 0.03125, %v1247_v0  ;;  %v1252_v1 = vmul.f32 %v1250_v60, %v1250_v60  ;;  %v1368_v0 = vrot.slane %v2437_v3, %v754_v17 }
0x13d9   :  { %v1251_v5 = vsub.f32 %v1241_v35, %v1249_v61  ;;  %v1254_v62 = vsel %vm214_vm4, %v1252_v1, 0.0 }
0x13da   :  { %1255 = vadd.xlane.f32.xlu0 %v1254_v62 }
0x13db   :  { %v1253_v12 = vmul.f32 %v1251_v5, %v1251_v5 }
0x13dd   :  { %v1257_v7 = vsel %vm214_vm4, %v1253_v12, 0.0 }
0x13de   :  { %1258 = vadd.xlane.f32.xlu0 %v1257_v7 }
0x1463   :  { %v1256_v11 = vpop.xlane.xlu0 %1255 }
0x1464   :  { %v1260_v13 = vmul.f32 0.03125, %v1256_v11 }
0x1466   :  { %v1262_v14 = vadd.f32 1e-12, %v1260_v13 }
0x1467   :  { %v1259_v15 = vpop.xlane.xlu0 %1258 }
0x1468   :  { %2023 = vrsqrt.f32 %v1262_v14  ;;  %v1261_v16 = vmul.f32 0.03125, %v1259_v15 }
0x146a   :  { %v1263_v18 = vadd.f32 1e-12, %v1261_v16 }
0x146c   :  { %2025 = vrsqrt.f32 %v1263_v18 }
0x1475   :  { %v2024_v42 = vpop.eup %2023 }
0x1476   :  { %v1266_v22 = vmul.f32 %v2024_v42, %v1250_v60 }
0x1478   :  { %v1272_v21 = vmul.f32 %v1271_v23, %v1266_v22 }
0x1479   :  { %v2026_v9 = vpop.eup %2025 }
0x147a   :  { %v1267_v20 = vmul.f32 %v2026_v9, %v1251_v5  ;;  %v1278_v10 = vadd.f32 %v1277_v24, %v1272_v21  ;;  %v1479_v21 = vcvt.s32.f32 %v2205_v19 }
0x147c   :  { %v1273_v25 = vmul.f32 %v1271_v23, %v1267_v20  ;;  %vm1480_vm9 = vcmp.eq.f32.partialorder %v1479_v21, %v2281_v6 }
0x147e   :  { %v1279_v4 = vadd.f32 %v1277_v24, %v1273_v25  ;;  %v1481_v24 = vsel %vm1480_vm9, %v2284_v27, 0.0 }
0x147f   :  { %v1528_v25 = vsel %vm1527_vm10, %v1481_v24, 0.0 }
0x1480   :  { %v1280_v26 = vpack.c.bf16 %v1279_v4, %v1278_v10 }
0x1482   :  { %1890 = vmatmul.mubr.msk.bf16.vlgmr.msra.gmra.mxu1 %vm214_vm4, %v1280_v26 }
0x1483   :  { %1907 = vmatprep.mubr.msk.bf16.mxu1 %vm2087_vm0, %v2086_v2 }
0x1542   :  { %v1330_v33 = vpop.f32.mrf.mxu1 }
0x1543   :  { %v1331_v36 = vadd.f32 %v1330_v33, %v1284_v31  ;;  %v1468_v33 = vrot.slane %v2437_v3, %v855_v52 }
0x1544   :  { %v1891_v37 = vpop.f32.mrf.mxu1 }
0x1545   :  { %v1337_v38 = vmul.f32 %v1331_v36, %v1331_v36  ;;  %v1474_v37 = vrot.slane %v2437_v3, %v861_v57 }
0x1546   :  { %v1333_v39 = vpop.f32.mrf.mxu1 }
0x1547   :  { %v1339_v40 = vmul.f32 %v1337_v38, %v1331_v36  ;;  %v1334_v43 = vadd.f32 %v1333_v39, %v1284_v31 }
0x1548   :  { %v1892_v41 = vpop.f32.mrf.mxu1 }
0x1549   :  { %v1341_v44 = vmul.f32 0.044715, %v1339_v40  ;;  %v1338_v45 = vmul.f32 %v1334_v43, %v1334_v43  ;;  %v1533_v41 = vld [vmem:[%s2581_s2 + $0x40] sm:$0x1] }
0x154a   :  { %v1544_v52 = vsel %vm214_vm4, %v1533_v41, 0 }
0x154b   :  { %v1343_v46 = vadd.f32 %v1341_v44, %v1331_v36  ;;  %v1340_v48 = vmul.f32 %v1338_v45, %v1334_v43  ;;  %v1482_v44 = vpack.c.bf16 %v1481_v24, %v1481_v24 }
0x154d   :  { %v1345_v49 = vmul.f32 0.7978846, %v1343_v46  ;;  %v1342_v50 = vmul.f32 0.044715, %v1340_v48 }
0x154f   :  { %2027 = vtanh.f32 %v1345_v49  ;;  %v1344_v32 = vadd.f32 %v1342_v50, %v1334_v43 }
0x1551   :  { %v1346_v51 = vmul.f32 0.7978846, %v1344_v32  ;;  %v1706_v32 = vld [vmem:[%s2582_s3 + $0x14] ss:$0 sm:$0xff]  ;;  %s2098_s3 = smov [#allocation2]  }
0x1552   :  { %s1622_s17 = sshll.u32 %s2098_s3, 4  ;;  %s1623_s17 = int_to_ptr.vmem [resolvable:$true] %s1622_s17 }
0x1553   :  { %2029 = vtanh.f32 %v1346_v51  ;;  %s2041_s18 = scalar_lea.vmem %s1623_s17, 32  ;;  %p2046_p1 = scmp.lt.s32.totalorder %s1623_s17, %s1623_s17 }
0x1554   :  { %p2042_p0 = scmp.ne.s32.totalorder %s1623_s17, %s2041_s18  ;;  %p2047_p2 = scmp.lt.s32.totalorder %s2041_s18, %s2041_s18 }
0x1556   :  { %p2048_p3 = por %p2047_p2, %p2046_p1 }
0x1558   :  { %p2049_p4 = pnand %p2048_p3, %p2042_p0 }
0x155c   :  { %v2028_v55 = vpop.eup %2027 }
0x155d   :  { %v1349_v47 = vadd.f32 1.0, %v2028_v55 }
0x155f   :  { %v1351_v56 = vmul.f32 0.5, %v1349_v47 }
0x1560   :  { %v2030_v53 = vpop.eup %2029 }
0x1561   :  { %v1350_v35 = vadd.f32 1.0, %v2030_v53  ;;  %v1353_v54 = vmul.f32 %v1351_v56, %v1331_v36 }
0x1563   :  { %v1352_v58 = vmul.f32 0.5, %v1350_v35 }
0x1565   :  { %v1354_v59 = vmul.f32 %v1352_v58, %v1334_v43 }
0x1567   :  { %v1355_v60 = vpack.c.bf16 %v1354_v59, %v1353_v54 }
0x1569   :  { %1902 = vmatmul.mubr.msk.bf16.vlgmr.msra.gmra.mxu0 %vm780_vm8, %v1355_v60  ;;  %v1588_v60 = vld [vmem:[%s2586_s7] sm:$0x3] }
0x1629   :  { %v1430_v61 = vpop.f32.mrf.mxu0 }
0x162a   :  { %v1431_v1 = vadd.f32 %v1430_v61, %v1368_v0 }
0x162b   :  { %v1903_v5 = vpop.f32.mrf.mxu0 }
0x162c   :  { %v1437_v62 = vadd.f32 %v1431_v1, %v1278_v10 }
0x162d   :  { %v1433_v12 = vpop.f32.mrf.mxu0 }
0x162e   :  { %v1434_v7 = vadd.f32 %v1433_v12, %v1368_v0  ;;  %v1439_v63 = vsel %vm214_vm4, %v1437_v62, 0.0 }
0x162f   :  { %1440 = vadd.xlane.f32.xlu1 %v1439_v63  ;;  %v1904_v8 = vpop.f32.mrf.mxu0 }
0x1630   :  { %v1438_v11 = vadd.f32 %v1434_v7, %v1279_v4 }
0x1632   :  { %v1442_v13 = vsel %vm214_vm4, %v1438_v11, 0.0 }
0x1633   :  { %1443 = vadd.xlane.f32.xlu0 %v1442_v13 }
0x16b8   :  { %v1441_v14 = vpop.xlane.xlu1 %1440 }
0x16b9   :  { %v1445_v15 = vmul.f32 0.03125, %v1441_v14 }
0x16bb   :  { %v1447_v16 = vsub.f32 %v1437_v62, %v1445_v15 }
0x16bc   :  { %v1444_v18 = vpop.xlane.xlu0 %1443 }
0x16bd   :  { %v1446_v42 = vmul.f32 0.03125, %v1444_v18  ;;  %v1449_v17 = vmul.f32 %v1447_v16, %v1447_v16 }
0x16bf   :  { %v1448_v22 = vsub.f32 %v1438_v11, %v1446_v42  ;;  %v1451_v23 = vsel %vm214_vm4, %v1449_v17, 0.0 }
0x16c0   :  { %1452 = vadd.xlane.f32.xlu1 %v1451_v23 }
0x16c1   :  { %v1450_v9 = vmul.f32 %v1448_v22, %v1448_v22 }
0x16c3   :  { %v1454_v20 = vsel %vm214_vm4, %v1450_v9, 0.0 }
0x16c4   :  { %1455 = vadd.xlane.f32.xlu0 %v1454_v20  ;;  %1529 = vadd.xlane.f32.xlu1 %v1528_v25 }
0x1749   :  { %v1453_v10 = vpop.xlane.xlu1 %1452 }
0x174a   :  { %v1457_v4 = vmul.f32 0.03125, %v1453_v10 }
0x174c   :  { %v1459_v26 = vadd.f32 1e-12, %v1457_v4 }
0x174d   :  { %v1456_v29 = vpop.xlane.xlu0 %1455  ;;  %v1530_v19 = vpop.xlane.xlu1 %1529 }
0x174e   :  { %2031 = vrsqrt.f32 %v1459_v26  ;;  %v1458_v34 = vmul.f32 0.03125, %v1456_v29 }
0x1750   :  { %v1460_v28 = vadd.f32 1e-12, %v1458_v34 }
0x1752   :  { %2033 = vrsqrt.f32 %v1460_v28 }
0x1753   :  { %2035 = vrcp.f32 %v1530_v19 }
0x175b   :  { %v2032_v30 = vpop.eup %2031 }
0x175c   :  { %v1463_v31 = vmul.f32 %v2032_v30, %v1447_v16 }
0x175e   :  { %v1469_v27 = vmul.f32 %v1468_v33, %v1463_v31 }
0x175f   :  { %v2034_v6 = vpop.eup %2033 }
0x1760   :  { %v1464_v36 = vmul.f32 %v2034_v6, %v1448_v22  ;;  %v1475_v39 = vadd.f32 %v1474_v37, %v1469_v27  ;;  %v2036_v57 = vpop.eup %2035 }
0x1762   :  { %v1470_v38 = vmul.f32 %v1468_v33, %v1464_v36 }
0x1764   :  { %v1476_v40 = vadd.f32 %v1474_v37, %v1470_v38 }
0x1766   :  { %v1483_v43 = vpack.c.bf16 %v1476_v40, %v1475_v39 }
0x1768   :  { %1906 = vmatpush3.bf16.msra.mxu1 %v1483_v43 }
0x1769   :  { %1911 = vmatprep.subr.bf16.mxu1 %v2086_v2 }
0x176b   :  { %1908 = vmatmul.mubr.msk.bf16.vlgmr.msra.gmra.mxu1 %vm324_vm5, %v1482_v44 }
0x176c   :  { %1912 = vmatpush3.bf16.xpose.msra.mxu1 %v1544_v52  ;;  %1913 = vmatprep.mubr.msk.bf16.mxu1 %vm2087_vm0, %v2086_v2 }
0x182b   :  { %v1521_v3 = vpop.f32.mrf.mxu1 }
0x182c   :  { %v1532_v45 = vmul.f32 %v2036_v57, %v1521_v3 }
0x182d   :  { %v1909_v46 = vpop.f32.mrf.mxu1 }
0x182e   :  { %v1535_v48 = vpack.c.bf16 %v1532_v45, %v1532_v45 }
0x182f   :  { %v1524_v49 = vpop.f32.mrf.mxu1 }
0x1830   :  { %1914 = vmatmul.mubr.msk.bf16.vlgmr.msra.gmra.mxu1 %vm214_vm4, %v1535_v48 }
0x1831   :  { %v1910_v50 = vpop.f32.mrf.mxu1 }
0x18f0   :  { %v1580_v51 = vpop.f32.mrf.mxu1 }
0x18f1   :  { %v1581_v55 = vadd.f32 %v1706_v32, %v1580_v51 }
0x18f2   :  { %v1915_v47 = vpop.f32.mrf.mxu1 }
0x18f3   :  { %v1592_v2 = vand.u32 2147483647, %v1581_v55  ;;  %1587 = vst.msk [vmem:[#allocation2] sm:$0x3] %vm1586_vm11, %v1581_v55  ;;  %v1589_v0 = vmax.f32 %v1581_v55, 0.0  ;;  %v1590_v61 = vmul.f32 %v1588_v60, %v1581_v55 }
0x18f4   :  { %v1583_v53 = vpop.f32.mrf.mxu1 }
0x18f5   :  { %v1593_v56 = vsub.f32 0.0, %v1592_v2  ;;  %v1591_v5 = vsub.f32 %v1589_v0, %v1590_v61 }
0x18f6   :  { %v1916_v35 = vpop.f32.mrf.mxu1 }
0x18f7   :  { %v1594_v58 = vmul.f32 1.442695, %v1593_v56 }
0x18f9   :  { %2037 = vpow2.f32 %v1594_v58 }
0x1906   :  { %v2038_v54 = vpop.eup %2037 }
0x1907   :  { %v1596_v59 = vadd.f32 1.0, %v2038_v54 }
0x1909   :  { %2039 = vlog2.f32 %v1596_v59 }
0x1916   :  { %v2040_v1 = vpop.eup %2039 }
0x1917   :  { %v1598_v62 = vmul.f32 0.6931472, %v2040_v1 }
0x1919   :  { %v1599_v12 = vadd.f32 %v1598_v62, %v1591_v5 }
0x191b   :  { %v1600_v7 = vsel %vm1586_vm11, %v1599_v12, 0.0 }
0x191c   :  { %1601 = vadd.xlane.f32.xlu0 %v1600_v7 }
0x191d   :  { %2052 = shalt.err (!%p2049_p4)
}
0x191e   :  { %1625 = dma.vmem_to_hbm [thread:$0]  %s1623_s17, 32, %s2587_s8, [#allocation3]   ;;  %vm1605_vm12 = vcmask 1041408   ;;  %vm1614_vm13 = vcmask 0  }
0x191f   :  { %s2099_s20 = smov [#allocation4]  }
0x1920   :  { %s1632_s21 = sshll.u32 %s2099_s20, 4  ;;  %s1633_s21 = int_to_ptr.vmem [resolvable:$true] %s1632_s21 }
0x1921   :  { %s2061_s23 = scalar_lea.vmem %s1633_s21, 16  ;;  %s2065_s24 = scalar_lea.vmem %s1633_s21, 32 }
0x1922   :  { %p2062_p5 = scmp.ne.s32.totalorder %s1633_s21, %s2061_s23  ;;  %p2066_p6 = scmp.lt.s32.totalorder %s1633_s21, %s1633_s21 }
0x1923   :  { %p2067_p7 = scmp.lt.s32.totalorder %s2065_s24, %s2061_s23 }
0x1925   :  { %p2068_p8 = por %p2067_p7, %p2066_p6 }
0x1927   :  { %p2069_p9 = pnand %p2068_p8, %p2062_p5 }
0x19a5   :  { %v1602_v63 = vpop.xlane.xlu0 %1601 }
0x19a6   :  { %v1604_v8 = vmul.f32 0.5, %v1602_v63 }
0x19a8   :  { %v1606_v11 = vsel %vm1605_vm12, %v1604_v8, 0.0 }
0x19a9   :  { %v1607_v13 = vrot.slane %v1606_v11, 4 }
0x19ab   :  { %v1608_v14 = vadd.f32 %v1607_v13, %v1606_v11 }
0x19ad   :  { %v1609_v15 = vrot.slane %v1608_v14, 2 }
0x19af   :  { %v1610_v16 = vadd.f32 %v1609_v15, %v1608_v14 }
0x19b1   :  { %v1611_v18 = vrot.slane %v1610_v16, 1 }
0x19b3   :  { %v1612_v42 = vadd.f32 %v1611_v18, %v1610_v16 }
0x19b5   :  { %v1613_v17 = vmul.f32 0.5, %v1612_v42 }
0x19b7   :  { %1615 = vst.msk [vmem:[#allocation4] sm:$0x1] %vm1614_vm13, %v1613_v17 }
0x19b8   :  { %2072 = shalt.err (!%p2069_p9)
}
0x19b9   :  { %1635 = dma.vmem_to_hbm [thread:$0]  %s1633_s21, 16, %s2588_s9, [#allocation5]  }
0x19ba   :  { %2081 = dma.done.wait [#allocation3], 32  }
0x19bb   :  { %2082 = vsyncadd [#allocation3], 4294967264 }
0x19bc   :  { %2083 = dma.done.wait [#allocation5], 16  }
0x19bd   :  { %2084 = vsyncadd [#allocation5], 4294967280 }
0x19be   :  { %1642 = vsyncpa [#allocation3], 1 }
0x19bf   :  { %1643 = vsyncpa [#allocation5], 1 }

</bundles_post_ra>
